<compile_context>
chip_gen: v7x
topology: tpu7x:2x2x1
jax: 0.10.0
libtpu: 0.0.40
codegen_flags: <defaults>
</compile_context>

<pallas_src>
import functools

import jax
import jax.numpy as jnp
from jax.experimental import pallas as pl
from jax.experimental.pallas import tpu as pltpu

LN_EPS = 1e-5  # nn.LayerNorm default


def fnn_kernel(text_ref, wf_ref, ln_ref, w2_ref, b2_ref, o_ref):
    ids = text_ref[...]                               # (TM, L) int32
    tm, seq_len = ids.shape
    lv, hid = wf_ref.shape                            # (L*V, H) fused emb@W1
    vocab = lv // seq_len

    # K-chunking: each chunk covers `ppc` token positions (= ppc*V ~ 128 lanes)
    # so only a single 128-lane one-hot slab is live at a time.
    ppc = max(1, 128 // vocab)
    if seq_len % ppc != 0:
        ppc = seq_len                                 # fall back to one chunk
    kw = ppc * vocab
    n_chunks = seq_len // ppc

    # Hoisted out of the loop (same pattern every chunk; JAX won't CSE it).
    col = jax.lax.broadcasted_iota(jnp.int32, (tm, kw), 1)

    # --- embedding lookup + flatten + fc1 in one matmul ------------------------
    # one_hot[b, p*V + v] = (ids[b, l] == v) for l = c*ppc + p; W_fused rows are
    # laid out so this reproduces torch's embedding(text).view(B,-1) @ W1^T.
    h = jnp.zeros((tm, hid), jnp.float32)
    for c in range(n_chunks):                         # static, small
        mask = None
        for p in range(ppc):
            l = c * ppc + p
            key = ids[:, l:l + 1] + p * vocab         # (TM, 1), in [p*V,(p+1)*V)
            m = col == key
            mask = m if mask is None else jnp.logical_or(mask, m)
        onehot = mask.astype(jnp.bfloat16)            # ONE cast per chunk
        h = h + jnp.dot(onehot, wf_ref[pl.ds(c * kw, kw), :],
                        preferred_element_type=jnp.float32)

    # --- fc1 bias + LayerNorm(hid_dim): two-pass stats, f32 --------------------
    h = h + ln_ref[0:1, :]                            # fc1 bias
    mean = jnp.mean(h, axis=-1, keepdims=True)
    d = h - mean
    var = jnp.mean(d * d, axis=-1, keepdims=True)
    h = d * jax.lax.rsqrt(var + LN_EPS)
    h = h * ln_ref[1:2, :] + ln_ref[2:3, :]           # gamma, beta

    # --- ReLU; Dropout(0.3) is identity at inference ---------------------------
    # TODO(synk): training-mode dropout (PRNG mask) not implemented.
    h = jnp.maximum(h, 0.0)

    # --- fc2 (output lane-padded to 128 -> unmasked, lane-dense store) ---------
    out = jnp.dot(h.astype(jnp.bfloat16), w2_ref[...],
                  preferred_element_type=jnp.float32)
    out = out + b2_ref[...]
    o_ref[...] = out.astype(o_ref.dtype)


def pack_params(emb_table, w1_t, b1, gamma, beta, w2_t, b2, max_seq_length):
    """One-time (load-time) parameter packing for the fused kernel."""
    vocab, emb_dim = emb_table.shape
    d_in, hid = w1_t.shape
    assert d_in == max_seq_length * emb_dim
    out_dim = w2_t.shape[1]
    o_pad = max(128, ((out_dim + 127) // 128) * 128)

    # Fold embedding + flatten + fc1 into one dense (L*V, H) matrix (exact).
    # Row (l*V + v) = emb_table[v] @ w1_t[l*E:(l+1)*E, :].
    w1_blk = w1_t.astype(jnp.float32).reshape(max_seq_length, emb_dim, hid)
    w_fused = jnp.einsum("ve,leh->lvh", emb_table.astype(jnp.float32), w1_blk)
    w_fused = w_fused.reshape(max_seq_length * vocab, hid).astype(jnp.bfloat16)

    ln = jnp.stack([b1, gamma, beta], axis=0).astype(jnp.float32)       # (3, H)
    w2_pad = jnp.zeros((hid, o_pad), jnp.bfloat16)
    w2_pad = w2_pad.at[:, :out_dim].set(w2_t.astype(jnp.bfloat16))
    b2_pad = jnp.zeros((1, o_pad), jnp.float32)
    b2_pad = b2_pad.at[:, :out_dim].set(b2.reshape(1, out_dim).astype(jnp.float32))
    return w_fused, ln, w2_pad, b2_pad


def _default_batch_tile(batch):
    """One grid step on single-TC chips (v5e/v6e); grid>=2 tiles on v7x (2 TCs)."""
    try:
        kind = jax.devices()[0].device_kind.lower()
    except Exception:
        kind = ""
    single_tc = any(s in kind for s in
                    ("v5e", "v5 lite", "v5lite", "v6e", "v6 lite", "v6lite"))
    aligned = max(8, ((batch + 7) // 8) * 8)          # sublane-aligned batch tile
    if single_tc:
        return min(512, aligned)                      # drop fixed per-step overhead
    return min(128, aligned)                          # B>=256 -> both v7x TCs busy


@functools.partial(jax.jit, static_argnames=("output_dim", "tm"))
def _fnn_forward(text, w_fused, ln, w2_pad, b2_pad, *, output_dim, tm):
    b, seq_len = text.shape
    lv, hid = w_fused.shape
    o_pad = w2_pad.shape[1]

    b_pad = ((b + tm - 1) // tm) * tm
    if b_pad != b:
        text = jnp.pad(text, ((0, b_pad - b), (0, 0)))

    pinned = pl.Buffered(1)   # grid-invariant weights: no double buffering
    out = pl.pallas_call(
        fnn_kernel,
        out_shape=jax.ShapeDtypeStruct((b_pad, o_pad), jnp.float32),
        grid_spec=pltpu.PrefetchScalarGridSpec(
            num_scalar_prefetch=0,
            grid=(b_pad // tm,),
            in_specs=[
                pl.BlockSpec((tm, seq_len), lambda i: (i, 0)),     # token ids
                pl.BlockSpec((lv, hid), lambda i: (0, 0),          # fused emb@W1
                             pipeline_mode=pinned),
                pl.BlockSpec((3, hid), lambda i: (0, 0),           # [b1; gamma; beta]
                             pipeline_mode=pinned),
                pl.BlockSpec((hid, o_pad), lambda i: (0, 0),       # W2 bf16, lane-padded
                             pipeline_mode=pinned),
                pl.BlockSpec((1, o_pad), lambda i: (0, 0),         # b2, lane-padded
                             pipeline_mode=pinned),
            ],
            out_specs=pl.BlockSpec((tm, o_pad), lambda i: (i, 0)),
        ),
        compiler_params=pltpu.CompilerParams(
            # Batch tiles are independent -> shard across TCs on v7x.
            dimension_semantics=("parallel",),
        ),
    )(text, w_fused, ln, w2_pad, b2_pad)
    return out[:b, :output_dim]


def hate_speech_fnn_forward(text, w_fused, ln, w2_pad, b2_pad, *,
                            output_dim, tm=None):
    """text: (B, L) int32 token ids.  Returns (B, output_dim) f32 logits."""
    if tm is None:
        tm = _default_batch_tile(text.shape[0])
    return _fnn_forward(text, w_fused, ln, w2_pad, b2_pad,
                        output_dim=output_dim, tm=int(tm))


if __name__ == "__main__":
    # Hyperparameters consistent with the torch module.
    vocab_size = 32
    embed_dim = 16
    max_seq_length = 8
    hid_dim = 128
    output_dim = 8
    pad_idx = 0
    batch = 256                      # two 128-row tiles on v7x, one 256-row tile on v5e/v6e
    d_in = embed_dim * max_seq_length  # 128

    key = jax.random.PRNGKey(0)
    k_emb, k_w1, k_b1, k_g, k_be, k_w2, k_b2, k_txt = jax.random.split(key, 8)

    emb_table = jax.random.normal(k_emb, (vocab_size, embed_dim), jnp.float32) * 0.1
    emb_table = emb_table.at[pad_idx].set(0.0)     # fresh nn.Embedding zeroes padding_idx row

    # torch fc1.weight is (hid, d_in); we store the transpose for x @ W^T.
    w1_t = jax.random.normal(k_w1, (d_in, hid_dim), jnp.float32) * 0.05
    b1 = jax.random.normal(k_b1, (hid_dim,), jnp.float32) * 0.05
    gamma = 1.0 + 0.1 * jax.random.normal(k_g, (hid_dim,), jnp.float32)   # ln1.weight
    beta = 0.05 * jax.random.normal(k_be, (hid_dim,), jnp.float32)        # ln1.bias
    w2_t = jax.random.normal(k_w2, (hid_dim, output_dim), jnp.float32) * 0.05
    b2 = jax.random.normal(k_b2, (output_dim,), jnp.float32) * 0.05

    text = jax.random.randint(k_txt, (batch, max_seq_length), 0, vocab_size, jnp.int32)
    text = text.at[:, -2:].set(pad_idx)            # simulate right-padding

    packed = pack_params(emb_table, w1_t, b1, gamma, beta, w2_t, b2, max_seq_length)
    out = hate_speech_fnn_forward(text, *packed, output_dim=output_dim)
    out = jax.block_until_ready(out)

    # Pure-JAX f32 reference (matches the torch module in eval mode).
    x = jnp.take(emb_table, text, axis=0).reshape(batch, -1)
    h = x @ w1_t + b1
    mu = jnp.mean(h, axis=-1, keepdims=True)
    vr = jnp.mean((h - mu) ** 2, axis=-1, keepdims=True)
    h = (h - mu) / jnp.sqrt(vr + LN_EPS) * gamma + beta
    h = jnp.maximum(h, 0.0)
    ref = h @ w2_t + b2

    assert out.shape == (batch, output_dim)
    max_err = float(jnp.max(jnp.abs(out - ref)))
    # bf16 matmul operands (f32 accumulate) -> loosened tolerance.
    assert jnp.allclose(out, ref, atol=3e-2, rtol=3e-2), f"max abs err {max_err}"
    print("KERNEL_OK")
</pallas_src>

<mosaic_0001>
module attributes {stable_mosaic.version = 11 : i64} {
  func.func @fnn_kernel(%arg0: i32, %arg1: memref<128x8xi32, #tpu.memory_space<vmem>>, %arg2: memref<256x128xbf16, #tpu.memory_space<vmem>>, %arg3: memref<3x128xf32, #tpu.memory_space<vmem>>, %arg4: memref<128x128xbf16, #tpu.memory_space<vmem>>, %arg5: memref<1x128xf32, #tpu.memory_space<vmem>>, %arg6: memref<128x128xf32, #tpu.memory_space<vmem>>) attributes {dimension_semantics = [#tpu.dimension_semantics<parallel>], iteration_bounds = array<i64: 2>, scalar_prefetch = 0 : i64, scratch_operands = 0 : i64, tpu.core_type = #tpu.core_type<tc>, window_params = [{transform_indices = @transform_0, window_bounds = array<i64: 128, 8>}, {pipeline_mode = #tpu.pipeline_mode<synchronous>, transform_indices = @transform_1, window_bounds = array<i64: 256, 128>}, {pipeline_mode = #tpu.pipeline_mode<synchronous>, transform_indices = @transform_2, window_bounds = array<i64: 3, 128>}, {pipeline_mode = #tpu.pipeline_mode<synchronous>, transform_indices = @transform_3, window_bounds = array<i64: 128, 128>}, {pipeline_mode = #tpu.pipeline_mode<synchronous>, transform_indices = @transform_4, window_bounds = array<i64: 1, 128>}, {transform_indices = @transform_5, window_bounds = array<i64: 128, 128>}]} {
    %c0 = arith.constant 0 : index
    %c0_0 = arith.constant 0 : index
    %0 = vector.load %arg1[%c0, %c0_0] : memref<128x8xi32, #tpu.memory_space<vmem>>, vector<128x8xi32>
    %1 = tpu.iota {dimensions = array<i32: 1>} : vector<128x128xi32>
    %cst = arith.constant 0.000000e+00 : f32
    %2 = vector.broadcast %cst : f32 to vector<128x128xf32>
    %3 = vector.extract_strided_slice %0 {offsets = [0, 0], sizes = [128, 1], strides = [1, 1]} : vector<128x8xi32> to vector<128x1xi32>
    %c0_i32 = arith.constant 0 : i32
    %4 = vector.broadcast %c0_i32 : i32 to vector<128x1xi32>
    %5 = arith.addi %3, %4 : vector<128x1xi32>
    %6 = vector.broadcast %5 : vector<128x1xi32> to vector<128x128xi32>
    %7 = arith.cmpi eq, %1, %6 : vector<128x128xi32>
    %8 = vector.extract_strided_slice %0 {offsets = [0, 1], sizes = [128, 1], strides = [1, 1]} : vector<128x8xi32> to vector<128x1xi32>
    %c32_i32 = arith.constant 32 : i32
    %9 = vector.broadcast %c32_i32 : i32 to vector<128x1xi32>
    %10 = arith.addi %8, %9 : vector<128x1xi32>
    %11 = vector.broadcast %10 : vector<128x1xi32> to vector<128x128xi32>
    %12 = arith.cmpi eq, %1, %11 : vector<128x128xi32>
    %13 = arith.ori %7, %12 : vector<128x128xi1>
    %14 = vector.extract_strided_slice %0 {offsets = [0, 2], sizes = [128, 1], strides = [1, 1]} : vector<128x8xi32> to vector<128x1xi32>
    %c64_i32 = arith.constant 64 : i32
    %15 = vector.broadcast %c64_i32 : i32 to vector<128x1xi32>
    %16 = arith.addi %14, %15 : vector<128x1xi32>
    %17 = vector.broadcast %16 : vector<128x1xi32> to vector<128x128xi32>
    %18 = arith.cmpi eq, %1, %17 : vector<128x128xi32>
    %19 = arith.ori %13, %18 : vector<128x128xi1>
    %20 = vector.extract_strided_slice %0 {offsets = [0, 3], sizes = [128, 1], strides = [1, 1]} : vector<128x8xi32> to vector<128x1xi32>
    %c96_i32 = arith.constant 96 : i32
    %21 = vector.broadcast %c96_i32 : i32 to vector<128x1xi32>
    %22 = arith.addi %20, %21 : vector<128x1xi32>
    %23 = vector.broadcast %22 : vector<128x1xi32> to vector<128x128xi32>
    %24 = arith.cmpi eq, %1, %23 : vector<128x128xi32>
    %25 = arith.ori %19, %24 : vector<128x128xi1>
    %26 = arith.extui %25 : vector<128x128xi1> to vector<128x128xi32>
    %27 = arith.sitofp %26 : vector<128x128xi32> to vector<128x128xf32>
    %28 = arith.truncf %27 : vector<128x128xf32> to vector<128x128xbf16>
    %c0_1 = arith.constant 0 : index
    %c0_2 = arith.constant 0 : index
    %29 = vector.load %arg2[%c0_1, %c0_2] : memref<256x128xbf16, #tpu.memory_space<vmem>>, vector<128x128xbf16>
    %cst_3 = arith.constant dense<0.000000e+00> : vector<128x128xf32>
    %30 = tpu.matmul %28, %29, %cst_3 {dimension_numbers = #tpu.dot_dimension_numbers<[1], [0], [0], [1], [0, 0, 1, 1], [], []>} : vector<128x128xbf16>, vector<128x128xbf16>, vector<128x128xf32> -> vector<128x128xf32>
    %31 = arith.addf %2, %30 : vector<128x128xf32>
    %32 = vector.extract_strided_slice %0 {offsets = [0, 4], sizes = [128, 1], strides = [1, 1]} : vector<128x8xi32> to vector<128x1xi32>
    %c0_i32_4 = arith.constant 0 : i32
    %33 = vector.broadcast %c0_i32_4 : i32 to vector<128x1xi32>
    %34 = arith.addi %32, %33 : vector<128x1xi32>
    %35 = vector.broadcast %34 : vector<128x1xi32> to vector<128x128xi32>
    %36 = arith.cmpi eq, %1, %35 : vector<128x128xi32>
    %37 = vector.extract_strided_slice %0 {offsets = [0, 5], sizes = [128, 1], strides = [1, 1]} : vector<128x8xi32> to vector<128x1xi32>
    %c32_i32_5 = arith.constant 32 : i32
    %38 = vector.broadcast %c32_i32_5 : i32 to vector<128x1xi32>
    %39 = arith.addi %37, %38 : vector<128x1xi32>
    %40 = vector.broadcast %39 : vector<128x1xi32> to vector<128x128xi32>
    %41 = arith.cmpi eq, %1, %40 : vector<128x128xi32>
    %42 = arith.ori %36, %41 : vector<128x128xi1>
    %43 = vector.extract_strided_slice %0 {offsets = [0, 6], sizes = [128, 1], strides = [1, 1]} : vector<128x8xi32> to vector<128x1xi32>
    %c64_i32_6 = arith.constant 64 : i32
    %44 = vector.broadcast %c64_i32_6 : i32 to vector<128x1xi32>
    %45 = arith.addi %43, %44 : vector<128x1xi32>
    %46 = vector.broadcast %45 : vector<128x1xi32> to vector<128x128xi32>
    %47 = arith.cmpi eq, %1, %46 : vector<128x128xi32>
    %48 = arith.ori %42, %47 : vector<128x128xi1>
    %49 = vector.extract_strided_slice %0 {offsets = [0, 7], sizes = [128, 1], strides = [1, 1]} : vector<128x8xi32> to vector<128x1xi32>
    %c96_i32_7 = arith.constant 96 : i32
    %50 = vector.broadcast %c96_i32_7 : i32 to vector<128x1xi32>
    %51 = arith.addi %49, %50 : vector<128x1xi32>
    %52 = vector.broadcast %51 : vector<128x1xi32> to vector<128x128xi32>
    %53 = arith.cmpi eq, %1, %52 : vector<128x128xi32>
    %54 = arith.ori %48, %53 : vector<128x128xi1>
    %55 = arith.extui %54 : vector<128x128xi1> to vector<128x128xi32>
    %56 = arith.sitofp %55 : vector<128x128xi32> to vector<128x128xf32>
    %57 = arith.truncf %56 : vector<128x128xf32> to vector<128x128xbf16>
    %c128 = arith.constant 128 : index
    %c0_8 = arith.constant 0 : index
    %58 = vector.load %arg2[%c128, %c0_8] : memref<256x128xbf16, #tpu.memory_space<vmem>>, vector<128x128xbf16>
    %cst_9 = arith.constant dense<0.000000e+00> : vector<128x128xf32>
    %59 = tpu.matmul %57, %58, %cst_9 {dimension_numbers = #tpu.dot_dimension_numbers<[1], [0], [0], [1], [0, 0, 1, 1], [], []>} : vector<128x128xbf16>, vector<128x128xbf16>, vector<128x128xf32> -> vector<128x128xf32>
    %60 = arith.addf %31, %59 : vector<128x128xf32>
    %c0_10 = arith.constant 0 : index
    %c0_11 = arith.constant 0 : index
    %61 = vector.load %arg3[%c0_10, %c0_11] : memref<3x128xf32, #tpu.memory_space<vmem>>, vector<1x128xf32>
    %62 = vector.broadcast %61 : vector<1x128xf32> to vector<128x128xf32>
    %63 = arith.addf %60, %62 : vector<128x128xf32>
    %cst_12 = arith.constant dense<0.000000e+00> : vector<128xf32>
    %64 = vector.multi_reduction <add>, %63, %cst_12 [1] : vector<128x128xf32> to vector<128xf32>
    %65 = vector.shape_cast %64 : vector<128xf32> to vector<128x1xf32>
    %cst_13 = arith.constant 1.280000e+02 : f32
    %66 = vector.broadcast %cst_13 : f32 to vector<128x1xf32>
    %67 = arith.divf %65, %66 : vector<128x1xf32>
    %68 = vector.broadcast %67 : vector<128x1xf32> to vector<128x128xf32>
    %69 = arith.subf %63, %68 : vector<128x128xf32>
    %70 = arith.mulf %69, %69 : vector<128x128xf32>
    %cst_14 = arith.constant dense<0.000000e+00> : vector<128xf32>
    %71 = vector.multi_reduction <add>, %70, %cst_14 [1] : vector<128x128xf32> to vector<128xf32>
    %72 = vector.shape_cast %71 : vector<128xf32> to vector<128x1xf32>
    %cst_15 = arith.constant 1.280000e+02 : f32
    %73 = vector.broadcast %cst_15 : f32 to vector<128x1xf32>
    %74 = arith.divf %72, %73 : vector<128x1xf32>
    %cst_16 = arith.constant 9.99999974E-6 : f32
    %75 = vector.broadcast %cst_16 : f32 to vector<128x1xf32>
    %76 = arith.addf %74, %75 : vector<128x1xf32>
    %77 = math.rsqrt %76 : vector<128x1xf32>
    %78 = vector.broadcast %77 : vector<128x1xf32> to vector<128x128xf32>
    %79 = arith.mulf %69, %78 : vector<128x128xf32>
    %c1 = arith.constant 1 : index
    %c0_17 = arith.constant 0 : index
    %80 = vector.load %arg3[%c1, %c0_17] : memref<3x128xf32, #tpu.memory_space<vmem>>, vector<1x128xf32>
    %81 = vector.broadcast %80 : vector<1x128xf32> to vector<128x128xf32>
    %82 = arith.mulf %79, %81 : vector<128x128xf32>
    %c2 = arith.constant 2 : index
    %c0_18 = arith.constant 0 : index
    %83 = vector.load %arg3[%c2, %c0_18] : memref<3x128xf32, #tpu.memory_space<vmem>>, vector<1x128xf32>
    %84 = vector.broadcast %83 : vector<1x128xf32> to vector<128x128xf32>
    %85 = arith.addf %82, %84 : vector<128x128xf32>
    %cst_19 = arith.constant 0.000000e+00 : f32
    %86 = vector.broadcast %cst_19 : f32 to vector<128x128xf32>
    %87 = arith.maximumf %85, %86 : vector<128x128xf32>
    %88 = arith.truncf %87 : vector<128x128xf32> to vector<128x128xbf16>
    %c0_20 = arith.constant 0 : index
    %c0_21 = arith.constant 0 : index
    %89 = vector.load %arg4[%c0_20, %c0_21] : memref<128x128xbf16, #tpu.memory_space<vmem>>, vector<128x128xbf16>
    %cst_22 = arith.constant dense<0.000000e+00> : vector<128x128xf32>
    %90 = tpu.matmul %88, %89, %cst_22 {dimension_numbers = #tpu.dot_dimension_numbers<[1], [0], [0], [1], [0, 0, 1, 1], [], []>} : vector<128x128xbf16>, vector<128x128xbf16>, vector<128x128xf32> -> vector<128x128xf32>
    %c0_23 = arith.constant 0 : index
    %c0_24 = arith.constant 0 : index
    %91 = vector.load %arg5[%c0_23, %c0_24] : memref<1x128xf32, #tpu.memory_space<vmem>>, vector<1x128xf32>
    %92 = vector.broadcast %91 : vector<1x128xf32> to vector<128x128xf32>
    %93 = arith.addf %90, %92 : vector<128x128xf32>
    %c0_25 = arith.constant 0 : index
    %c0_26 = arith.constant 0 : index
    %94 = vector.load %arg6[%c0_25, %c0_26] : memref<128x128xf32, #tpu.memory_space<vmem>>, vector<128x128xf32>
    tpu.vector_store %arg6[%c0_25, %c0_26], %93 {strides = array<i32>} : memref<128x128xf32, #tpu.memory_space<vmem>>, vector<128x128xf32>,
    return
  }
  func.func @transform_0(%arg0: i32) -> (i32, i32) {
    %c0_i32 = arith.constant 0 : i32
    %c0_i32_0 = arith.constant 0 : i32
    return %arg0, %c0_i32 : i32, i32
  }
  func.func @transform_1(%arg0: i32) -> (i32, i32) {
    %c0_i32 = arith.constant 0 : i32
    %c0_i32_0 = arith.constant 0 : i32
    %c0_i32_1 = arith.constant 0 : i32
    return %c0_i32, %c0_i32_0 : i32, i32
  }
  func.func @transform_2(%arg0: i32) -> (i32, i32) {
    %c0_i32 = arith.constant 0 : i32
    %c0_i32_0 = arith.constant 0 : i32
    %c0_i32_1 = arith.constant 0 : i32
    return %c0_i32, %c0_i32_0 : i32, i32
  }
  func.func @transform_3(%arg0: i32) -> (i32, i32) {
    %c0_i32 = arith.constant 0 : i32
    %c0_i32_0 = arith.constant 0 : i32
    %c0_i32_1 = arith.constant 0 : i32
    return %c0_i32, %c0_i32_0 : i32, i32
  }
  func.func @transform_4(%arg0: i32) -> (i32, i32) {
    %c0_i32 = arith.constant 0 : i32
    %c0_i32_0 = arith.constant 0 : i32
    %c0_i32_1 = arith.constant 0 : i32
    return %c0_i32, %c0_i32_0 : i32, i32
  }
  func.func @transform_5(%arg0: i32) -> (i32, i32) {
    %c0_i32 = arith.constant 0 : i32
    %c0_i32_0 = arith.constant 0 : i32
    return %arg0, %c0_i32 : i32, i32
  }
}

</mosaic_0001>

<bundles_post_ra>
// kernel: _fnn_forward.1
= control target key start
LH: loop header
LB: loop body
LE: loop exit
PB: predicated region body
PF: predicated region fallthrough
CT: control target
= control target key end

     0   :  { %s2247_s18 = smov 0   ;;  %s3319_s0 = inlined_call_operand.vmem [shape: s32[256,8], index: 0, kind: input, shape index: {}]   ;;  %s3320_s1 = inlined_call_operand.vmem [shape: bf16[256,128], index: 1, kind: input, shape index: {}]   ;;  %s3321_s2 = inlined_call_operand.vmem [shape: f32[3,128], index: 2, kind: input, shape index: {}]   ;;  %s3322_s3 = inlined_call_operand.vmem [shape: bf16[128,128], index: 3, kind: input, shape index: {}]   ;;  %s3323_s4 = inlined_call_operand.vmem [shape: f32[1,128], index: 4, kind: input, shape index: {}]   ;;  %s3324_s5 = inlined_call_operand.vmem [shape: f32[256,128], index: 5, kind: output, shape index: {}]  }
   0x1 LB: > { %s1809_s19 = sadd.s32 4294967295, %s2206_s18   ;;  %p1813_p0 = scmp.ge.s32.totalorder %s2206_s18, 1  ;;  %s2206_s18 = sphi %s2247_s18, %s15_s18  }
   0x2   : > { %p188_p1 = scmp.lt.s32.totalorder %s2206_s18, 3 }
   0x4   : > { %p189_p2 = pnand %p1813_p0, %p188_p1 }
   0x6   : > { %192 = sbr.rel (%p189_p2) target bundleno = 1262 (0x4ee), region = 40 }
   0xd   : > { %s1814_s20 = sshll.u32 %s1809_s19, 4  ;;  %v2208_v0 = vmov 4   ;;  %v3332_v5 = vmov 5   ;;  %v3329_v14 = vmov 6   ;;  %v3327_v20 = vmov 7   ;;  %v2144_v27 = vld [vmem:[%s3320_s1 + $0x40] sm:$0xff]  }
   0xe   : > { %2090 = vset.pattern.permute.xlu1 %v2208_v0  ;;  %2089 = vset.pattern.permute.xlu0 %v2208_v0  ;;  %p217_p3 = scmp.lt.s32.totalorder %s1814_s20, 31  ;;  %v2145_v30 = vld [vmem:[%s3320_s1 + $0x48] sm:$0xff]   ;;  %v2146_v33 = vld [vmem:[%s3320_s1 + $0x50] sm:$0xff]   ;;  %v2147_v36 = vld [vmem:[%s3320_s1 + $0x58] sm:$0xff]   ;;  %v3325_v63 = vmov 0  }
   0xf   : > { %1960 = vmatprep.subr.bf16.mxu0 %v2144_v27  ;;  %v2148_v39 = vld [vmem:[%s3320_s1 + $0x60] sm:$0xff]   ;;  %v2149_v42 = vld [vmem:[%s3320_s1 + $0x68] sm:$0xff]   ;;  %v2150_v45 = vld [vmem:[%s3320_s1 + $0x70] sm:$0xff]  }
  0x10   : > { %s3443_s20 = smov (!%p217_p3, %s1814_s20), 31  ;;  %1961 = vmatpush3.bf16.msra.mxu0 %v2144_v27  ;;  %v2151_v47 = vld [vmem:[%s3320_s1 + $0x78] sm:$0xff]  }
  0x11   : > { %s1815_s21 = sshll.u32 %s3443_s20, 3  ;;  %1962 = vmatprep.subr.bf16.mxu0 %v2145_v30 }
  0x12   : > { %s2265_s24 = scalar_lea.vmem %s3319_s0, %s1815_s21  ;;  %s3298_s14 = scalar_lea.vmem %s3324_s5, %s1815_s21 }
  0x13   : > { %v2268_v1 = vld [vmem:[%s2265_s24 + $0x18] sm:$0xff]  ;;  %v2271_v2 = vld [vmem:[%s2265_s24] sm:$0xff]  ;;  %v2276_v3 = vld [vmem:[%s2265_s24 + $0x8] sm:$0xff] }
  0x14   : > { %665 = vperm.xlu1 %2090, %v2268_v1   ;;  %656 = vperm.xlu0 %2089, %v2271_v2   ;;  %v2279_v4 = vadd.s32 32, %v2271_v2  ;;  %v2285_v6 = vld [vmem:[%s2265_s24 + $0x10] sm:$0xff]  ;;  %v2288_v7 = vadd.s32 32, %v2276_v3  ;;  %v2293_v8 = vld [vmem:[%s2265_s24 + $0x28] sm:$0xff]  ;;  %v2296_v9 = vadd.s32 32, %v2268_v1  ;;  %v2302_v11 = vadd.s32 64, %v2271_v2 }
  0x15   : > { %v2299_v10 = vld [vmem:[%s2265_s24 + $0x30] sm:$0xff]  ;;  %v2305_v12 = vadd.s32 64, %v2285_v6  ;;  %v2310_v13 = vld [vmem:[%s2265_s24 + $0x48] sm:$0xff]  ;;  %v2321_v16 = vadd.s32 64, %v2268_v1  ;;  %v2329_v18 = vadd.s32 96, %v2276_v3  ;;  %v2338_v21 = vadd.s32 96, %v2285_v6  ;;  %1963 = vmatpush3.bf16.msra.mxu0 %v2145_v30 }
  0x16   : > { %v2317_v15 = vld [vmem:[%s2265_s24 + $0x50] sm:$0xff]  ;;  %v2325_v17 = vld [vmem:[%s2265_s24 + $0x68] sm:$0xff]  ;;  %v2342_v22 = vadd.s32 32, %v2285_v6  ;;  %v2348_v23 = vld [vmem:[%s2265_s24 + $0x20] sm:$0xff]  ;;  %v2351_v24 = vadd.s32 32, %v2299_v10  ;;  %v2372_v29 = vadd.s32 32, %v2293_v8  ;;  %1964 = vmatprep.subr.bf16.mxu0 %v2146_v33 }
  0x17   : > { %v2333_v19 = vld [vmem:[%s2265_s24 + $0x70] sm:$0xff]  ;;  %v2357_v25 = vadd.s32 32, %v2317_v15  ;;  %v2360_v26 = vadd.s32 32, %v2348_v23  ;;  %v2380_v31 = vadd.s32 64, %v2276_v3  ;;  %v2383_v32 = vld [vmem:[%s2265_s24 + $0x38] sm:$0xff]  ;;  %v2393_v34 = vadd.s32 64, %v2293_v8 }
  0x18   : > { %2091 = vset.pattern.permute.xlu1 %v3332_v5  ;;  %659 = vperm.xlu0 %2089, %v2276_v3   ;;  %v2369_v28 = vadd.s32 32, %v2333_v19  ;;  %v2396_v35 = vadd.s32 32, %v2383_v32  ;;  %v2404_v37 = vadd.s32 64, %v2310_v13  ;;  %v2408_v38 = vadd.s32 64, %v2348_v23  ;;  %v2463_v52 = vld [vmem:[%s2265_s24 + $0x40] sm:$0xff]  ;;  %v2472_v54 = vld [vmem:[%s2265_s24 + $0x58] sm:$0xff] }
  0x19   : > { %720 = vperm.xlu1 %2091, %v2279_v4   ;;  %1965 = vmatpush3.bf16.msra.mxu0 %v2146_v33  ;;  %v2415_v40 = vadd.s32 64, %v2325_v17  ;;  %v2420_v41 = vadd.s32 64, %v2299_v10  ;;  %v2427_v43 = vadd.s32 96, %v2271_v2  ;;  %v2431_v44 = vadd.s32 64, %v2383_v32  ;;  %v2482_v57 = vld [vmem:[%s2265_s24 + $0x60] sm:$0xff]  ;;  %v2494_v60 = vld [vmem:[%s2265_s24 + $0x78] sm:$0xff] }
  0x1a   : > { %1966 = vmatprep.subr.bf16.mxu0 %v2147_v36  ;;  %v2439_v46 = vadd.s32 96, %v2268_v1  ;;  %v2446_v48 = vadd.s32 96, %v2293_v8  ;;  %v2450_v49 = vadd.s32 96, %v2348_v23  ;;  %v2455_v50 = vadd.s32 96, %v2299_v10  ;;  %3352 = vst [vmem:[#allocation2_spill] sm:$0xff] %v2482_v57  ;;  %3353 = vst [vmem:[#allocation3_spill] sm:$0xff] %v2494_v60 }
  0x1b   : > { %v2459_v51 = vadd.s32 96, %v2383_v32  ;;  %v2467_v53 = vadd.s32 96, %v2463_v52  ;;  %v2475_v55 = vadd.s32 32, %v2463_v52  ;;  %v2479_v56 = vadd.s32 96, %v2472_v54 }
  0x1c   : > { %662 = vperm.xlu0 %2089, %v2285_v6   ;;  %v2487_v58 = vadd.s32 32, %v2310_v13  ;;  %v2491_v59 = vadd.s32 96, %v2482_v57  ;;  %v2499_v61 = vadd.s32 96, %v2494_v60  ;;  %v2505_v62 = vadd.s32 32, %v2472_v54 }
  0x1d   : > { %723 = vperm.xlu1 %2091, %v2288_v7   ;;  %1967 = vmatpush3.bf16.msra.mxu0 %v2147_v36  ;;  %v2512_v27 = vadd.s32 64, %v2463_v52  ;;  %v2518_v30 = vadd.s32 64, %v2317_v15 }
  0x1e   : > { %1968 = vmatprep.subr.bf16.mxu0 %v2148_v39 }
  0x1f   : > { %3354 = vst [vmem:[#allocation4_spill] sm:$0xff] %v2512_v27  ;;  %3355 = vst [vmem:[#allocation5_spill] sm:$0xff] %v2518_v30 }
  0x20   : > { %671 = vperm.xlu0 %2089, %v2293_v8  }
  0x21   : > { %729 = vperm.xlu1 %2091, %v2296_v9   ;;  %1969 = vmatpush3.bf16.msra.mxu0 %v2148_v39 }
  0x22   : > { %1970 = vmatprep.subr.bf16.mxu0 %v2149_v42 }
  0x24   : > { %674 = vperm.xlu0 %2089, %v2299_v10  }
  0x25   : > { %2092 = vset.pattern.permute.xlu1 %v3329_v14  ;;  %1971 = vmatpush3.bf16.msra.mxu0 %v2149_v42 }
  0x26   : > { %800 = vperm.xlu1 %2092, %v2302_v11   ;;  %1972 = vmatprep.subr.bf16.mxu0 %v2150_v45 }
  0x28   : > { %683 = vperm.xlu0 %2089, %v2310_v13  }
  0x29   : > { %1973 = vmatpush3.bf16.msra.mxu0 %v2150_v45  ;;  %v3330_v45 = vmov 1  }
  0x2a   : > { %806 = vperm.xlu1 %2092, %v2305_v12   ;;  %1974 = vmatprep.subr.bf16.mxu0 %v2151_v47 }
  0x2c   : > { %686 = vperm.xlu0 %2089, %v2317_v15  }
  0x2d   : > { %1975 = vmatpush3.bf16.msra.mxu0 %v2151_v47  ;;  %v2561_v47 = vadd.s32 32, %v2325_v17 }
  0x2e   : > { %809 = vperm.xlu1 %2092, %v2321_v16  }
  0x2f   : > { %3360 = vst [vmem:[#allocation10_spill] sm:$0xff] %v2561_v47 }
  0x30   : > { %695 = vperm.xlu0 %2089, %v2325_v17  }
  0x32   : > { %2093 = vset.pattern.permute.xlu1 %v3327_v20 }
  0x33   : > { %883 = vperm.xlu1 %2093, %v2329_v18  }
  0x34   : > { %698 = vperm.xlu0 %2089, %v2333_v19  }
  0x37   : > { %886 = vperm.xlu1 %2093, %v2338_v21  }
  0x38   : > { %2108 = vset.pattern.permute.xlu0 %v3332_v5 }
  0x39   : > { %726 = vperm.xlu0 %2108, %v2342_v22  }
  0x3b   : > { %2094 = vset.pattern.permute.xlu1 %v2208_v0 }
  0x3c   : > { %668 = vperm.xlu1 %2094, %v2348_v23  }
  0x3d   : > { %738 = vperm.xlu0 %2108, %v2351_v24  }
  0x40   : > { %2095 = vset.pattern.permute.xlu1 %v3332_v5 }
  0x41   : > { %750 = vperm.xlu0 %2108, %v2357_v25   ;;  %732 = vperm.xlu1 %2095, %v2360_v26  }
  0x45   : > { %762 = vperm.xlu0 %2108, %v2369_v28   ;;  %735 = vperm.xlu1 %2095, %v2372_v29  }
  0x49   : > { %2110 = vset.pattern.permute.xlu0 %v3329_v14  ;;  %2096 = vset.pattern.permute.xlu1 %v2208_v0 }
  0x4a   : > { %803 = vperm.xlu0 %2110, %v2380_v31   ;;  %677 = vperm.xlu1 %2096, %v2383_v32  }
  0x4e   : > { %815 = vperm.xlu0 %2110, %v2393_v34   ;;  %2097 = vset.pattern.permute.xlu1 %v3332_v5 }
  0x4f   : > { %741 = vperm.xlu1 %2097, %v2396_v35  }
  0x52   : > { %827 = vperm.xlu0 %2110, %v2404_v37  }
  0x53   : > { %2098 = vset.pattern.permute.xlu1 %v3329_v14 }
  0x54   : > { %812 = vperm.xlu1 %2098, %v2408_v38  }
  0x56   : > { %839 = vperm.xlu0 %2110, %v2415_v40  }
  0x58   : > { %818 = vperm.xlu1 %2098, %v2420_v41  }
  0x5a   : > { %2113 = vset.pattern.permute.xlu0 %v3327_v20 }
  0x5b   : > { %880 = vperm.xlu0 %2113, %v2427_v43  }
  0x5c   : > { %821 = vperm.xlu1 %2098, %v2431_v44  }
  0x5f   : > { %889 = vperm.xlu0 %2113, %v2439_v46  }
  0x60   : > { %2099 = vset.pattern.permute.xlu1 %v3327_v20 }
  0x61   : > { %895 = vperm.xlu1 %2099, %v2446_v48  }
  0x63   : > { %892 = vperm.xlu0 %2113, %v2450_v49  }
  0x65   : > { %898 = vperm.xlu1 %2099, %v2455_v50  }
  0x67   : > { %901 = vperm.xlu0 %2113, %v2459_v51  }
  0x69   : > { %2100 = vset.pattern.permute.xlu1 %v2208_v0 }
  0x6a   : > { %680 = vperm.xlu1 %2100, %v2463_v52  }
  0x6b   : > { %904 = vperm.xlu0 %2113, %v2467_v53  }
  0x6e   : > { %2101 = vset.pattern.permute.xlu1 %v3332_v5 }
  0x6f   : > { %744 = vperm.xlu1 %2101, %v2475_v55   ;;  %913 = vperm.xlu0 %2113, %v2479_v56  }
  0x73   : > { %747 = vperm.xlu1 %2101, %v2487_v58   ;;  %916 = vperm.xlu0 %2113, %v2491_v59  }
  0x77   : > { %2102 = vset.pattern.permute.xlu1 %v2208_v0  ;;  %925 = vperm.xlu0 %2113, %v2499_v61  }
  0x78   : > { %689 = vperm.xlu1 %2102, %v2472_v54  }
  0x7b   : > { %2116 = vset.pattern.permute.xlu0 %v3325_v63 }
  0x7c   : > { %2103 = vset.pattern.permute.xlu1 %v3332_v5  ;;  %251 = vperm.xlu0 %2116, %v2276_v3   ;;  %v2523_v3 = vadd.s32 64, %v2472_v54 }
  0x7d   : > { %753 = vperm.xlu1 %2103, %v2505_v62  }
  0x7e   : > { %3356 = vst [vmem:[#allocation6_spill] sm:$0xff] %v2523_v3 }
  0x80   : > { %254 = vperm.xlu0 %2116, %v2285_v6   ;;  %v2528_v6 = vadd.s32 96, %v2310_v13 }
  0x81   : > { %2104 = vset.pattern.permute.xlu1 %v3329_v14 }
  0x82   : > { %824 = vperm.xlu1 %2104, %v2512_v27   ;;  %3357 = vst [vmem:[#allocation7_spill] sm:$0xff] %v2528_v6  ;;  %v3370_v27 = vmov 0  }
  0x84   : > { %263 = vperm.xlu0 %2116, %v2293_v8   ;;  %v2534_v8 = vadd.s32 96, %v2317_v15 }
  0x86   : > { %830 = vperm.xlu1 %2104, %v2518_v30   ;;  %3358 = vst [vmem:[#allocation8_spill] sm:$0xff] %v2534_v8  ;;  %v3348_v30 = vmov 3  }
  0x88   : > { %266 = vperm.xlu0 %2116, %v2299_v10  }
  0x8a   : > { %833 = vperm.xlu1 %2104, %v2523_v3  }
  0x8c   : > { %275 = vperm.xlu0 %2116, %v2310_v13  }
  0x8e   : > { %2105 = vset.pattern.permute.xlu1 %v3327_v20 }
  0x8f   : > { %907 = vperm.xlu1 %2105, %v2528_v6   ;;  %v3364_v6 = vmov 6  }
  0x90   : > { %278 = vperm.xlu0 %2116, %v2317_v15   ;;  %v2551_v15 = vadd.s32 32, %v2482_v57 }
  0x92   : > { %3359 = vst [vmem:[#allocation9_spill] sm:$0xff] %v2551_v15 }
  0x93   : > { %v2537_v33 = vpop.permute.xlu1 %665  ;;  %910 = vperm.xlu1 %2105, %v2534_v8   ;;  %v2540_v10 = vpop.permute.xlu0 %656  ;;  %v3339_v8 = vmov 2  }
  0x94   : > { %287 = vperm.xlu0 %2116, %v2325_v17  }
  0x97   : > { %2106 = vset.pattern.permute.xlu1 %v2208_v0  ;;  %v2544_v13 = vpop.permute.xlu0 %659 }
  0x98   : > { %692 = vperm.xlu1 %2106, %v2482_v57   ;;  %v2547_v36 = vpop.permute.xlu1 %720  ;;  %290 = vperm.xlu0 %2116, %v2333_v19  }
  0x9b   : > { %v2553_v39 = vpop.permute.xlu0 %662 }
  0x9c   : > { %2107 = vset.pattern.permute.xlu1 %v3332_v5  ;;  %v2556_v42 = vpop.permute.xlu1 %723  ;;  %2136 = vset.pattern.permute.xlu0 %v3330_v45 }
  0x9d   : > { %756 = vperm.xlu1 %2107, %v2551_v15   ;;  %334 = vperm.xlu0 %2136, %v2342_v22   ;;  %v2580_v22 = vadd.s32 32, %v2494_v60 }
  0x9f   : > { %v2564_v63 = vpop.permute.xlu0 %671  ;;  %3361 = vst [vmem:[#allocation11_spill] sm:$0xff] %v2580_v22 }
  0xa0   : > { %v2566_v20 = vpop.permute.xlu1 %729 }
  0xa1   : > { %759 = vperm.xlu1 %2107, %v2561_v47   ;;  %346 = vperm.xlu0 %2136, %v2351_v24   ;;  %v3362_v24 = vmov 5   ;;  %v2590_v47 = vadd.s32 64, %v2482_v57  ;;  %v3368_v57 = vmov 7  }
  0xa3   : > { %v2570_v14 = vpop.permute.xlu0 %674  ;;  %3363 = vst [vmem:[#allocation12_spill] sm:$0xff] %v2590_v47 }
  0xa5   : > { %2109 = vset.pattern.permute.xlu1 %v2208_v0  ;;  %v2573_v45 = vpop.permute.xlu1 %800  ;;  %358 = vperm.xlu0 %2136, %v2357_v25  }
  0xa6   : > { %701 = vperm.xlu1 %2109, %v2494_v60  }
  0xa7   : > { %v2577_v5 = vpop.permute.xlu0 %683 }
  0xa9   : > { %v2582_v15 = vpop.permute.xlu1 %806  ;;  %370 = vperm.xlu0 %2136, %v2369_v28   ;;  %v2601_v28 = vadd.s32 64, %v2333_v19 }
  0xaa   : > { %2111 = vset.pattern.permute.xlu1 %v3362_v24 }
  0xab   : > { %765 = vperm.xlu1 %2111, %v2580_v22   ;;  %v2587_v0 = vpop.permute.xlu0 %686  ;;  %3365 = vst [vmem:[#allocation13_spill] sm:$0xff] %v2601_v28 }
  0xad   : > { %v2592_v25 = vpop.permute.xlu1 %809  ;;  %2138 = vset.pattern.permute.xlu0 %v3339_v8  ;;  %v2610_v8 = vadd.s32 64, %v2494_v60  ;;  %v2625_v60 = vadd.s32 96, %v2333_v19  ;;  %v245_v19 = vlaneseq }
  0xae   : > { %427 = vperm.xlu0 %2138, %v2380_v31  }
  0xaf   : > { %2112 = vset.pattern.permute.xlu1 %v3364_v6  ;;  %v2597_v3 = vpop.permute.xlu0 %695  ;;  %3366 = vst [vmem:[#allocation14_spill] sm:$0xff] %v2610_v8  ;;  %3369 = vst [vmem:[#allocation16_spill] sm:$0xff] %v2625_v60 }
  0xb0   : > { %836 = vperm.xlu1 %2112, %v2590_v47   ;;  %v2617_v47 = vadd.s32 96, %v2325_v17 }
  0xb2   : > { %v2603_v24 = vpop.permute.xlu1 %883  ;;  %439 = vperm.xlu0 %2138, %v2393_v34   ;;  %3367 = vst [vmem:[#allocation15_spill] sm:$0xff] %v2617_v47 }
  0xb3   : > { %v2606_v22 = vpop.permute.xlu0 %698 }
  0xb4   : > { %842 = vperm.xlu1 %2112, %v2601_v28  }
  0xb6   : > { %v2612_v31 = vpop.permute.xlu1 %886  ;;  %451 = vperm.xlu0 %2138, %v2404_v37  }
  0xb8   : > { %v727_v6 = vpop.permute.xlu0 %726  ;;  %845 = vperm.xlu1 %2112, %v2610_v8  }
  0xba   : > { %463 = vperm.xlu0 %2138, %v2415_v40  }
  0xbb   : > { %v2620_v34 = vpop.permute.xlu1 %668 }
  0xbc   : > { %2114 = vset.pattern.permute.xlu1 %v3368_v57  ;;  %v739_v28 = vpop.permute.xlu0 %738 }
  0xbd   : > { %919 = vperm.xlu1 %2114, %v2617_v47  }
  0xbe   : > { %2141 = vset.pattern.permute.xlu0 %v3348_v30 }
  0xbf   : > { %520 = vperm.xlu0 %2141, %v2427_v43   ;;  %v3371_v43 = vmov 1  }
  0xc0   : > { %v733_v37 = vpop.permute.xlu1 %732  ;;  %v2629_v17 = vpop.permute.xlu0 %750 }
  0xc1   : > { %922 = vperm.xlu1 %2114, %v2625_v60  }
  0xc3   : > { %529 = vperm.xlu0 %2141, %v2439_v46   ;;  %v2643_v46 = vand.u32 127, %v245_v19 }
  0xc4   : > { %v736_v40 = vpop.permute.xlu1 %735  ;;  %v2633_v8 = vpop.permute.xlu0 %762 }
  0xc5   : > { %2115 = vset.pattern.permute.xlu1 %v3370_v27  ;;  %vm703_vm0 = vcmp.eq.s32.totalorder %v2643_v46, %v2540_v10  ;;  %vm767_vm1 = vcmp.eq.s32.totalorder %v2643_v46, %v2547_v36  ;;  %vm705_vm2 = vcmp.eq.s32.totalorder %v2643_v46, %v2553_v39  ;;  %vm769_vm3 = vcmp.eq.s32.totalorder %v2643_v46, %v727_v6  ;;  %v2155_v6 = vld [vmem:[%s3320_s1 + $0x18] sm:$0xff]  }
  0xc6   : > { %248 = vperm.xlu1 %2115, %v2271_v2   ;;  %vm704_vm4 = vcmp.eq.s32.totalorder %v2643_v46, %v2544_v13  ;;  %vm768_vm5 = vcmp.eq.s32.totalorder %v2643_v46, %v2556_v42  ;;  %vm2663_vm6 = vmor %vm703_vm0, %vm767_vm1  ;;  %vm770_vm7 = vcmp.eq.s32.totalorder %v2643_v46, %v2566_v20  ;;  %vm706_vm9 = vcmp.eq.s32.totalorder %v2643_v46, %v2537_v33 }
  0xc7   : > { %532 = vperm.xlu0 %2141, %v2450_v49   ;;  %vm2671_vm8 = vmor %vm705_vm2, %vm769_vm3  ;;  %vm709_vm11 = vcmp.eq.s32.totalorder %v2643_v46, %v2570_v14  ;;  %vm847_vm12 = vcmp.eq.s32.totalorder %v2643_v46, %v2573_v45  ;;  %vm849_vm14 = vcmp.eq.s32.totalorder %v2643_v46, %v2582_v15  ;;  %vm850_vm15 = vcmp.eq.s32.totalorder %v2643_v46, %v2592_v25 }
  0xc8   : > { %vm2678_vm10 = vmor %vm704_vm4, %vm768_vm5  ;;  %vm773_vm0 = vcmp.eq.s32.totalorder %v2643_v46, %v739_v28  ;;  %vm771_vm3 = vcmp.eq.s32.totalorder %v2643_v46, %v733_v37  ;;  %vm772_vm5 = vcmp.eq.s32.totalorder %v2643_v46, %v736_v40  ;;  %v3404_v37 = vmov 3   ;;  %v2156_v40 = vld [vmem:[%s3320_s1 + $0x20] sm:$0xff]  }
  0xc9   : > { %v804_v30 = vpop.permute.xlu0 %803  ;;  %v2638_v47 = vpop.permute.xlu1 %677  ;;  %vm2688_vm13 = vmor %vm706_vm9, %vm770_vm7  ;;  %vm707_vm9 = vcmp.eq.s32.totalorder %v2643_v46, %v2620_v34 }
  0xca   : > { %2117 = vset.pattern.permute.xlu1 %v3371_v43  ;;  %vm848_vm1 = vcmp.eq.s32.totalorder %v2643_v46, %v804_v30  ;;  %vm2701_vm2 = vmor %vm2671_vm8, %vm849_vm14  ;;  %vm929_vm8 = vcmp.eq.s32.totalorder %v2643_v46, %v2612_v31 }
  0xcb   : > { %328 = vperm.xlu1 %2117, %v2279_v4   ;;  %541 = vperm.xlu0 %2141, %v2459_v51   ;;  %v2661_v4 = vld [vmem:[%s3320_s1] sm:$0xff]   ;;  %vm2716_vm7 = vmor %vm2663_vm6, %vm847_vm12 }
  0xcc   : > { %1992 = vmatprep.subr.bf16.mxu0 %v2661_v4  ;;  %vm2727_vm14 = vmor %vm709_vm11, %vm773_vm0 }
  0xcd   : > { %v816_v60 = vpop.permute.xlu0 %815  ;;  %vm2733_vm6 = vmor %vm2688_vm13, %vm850_vm15  ;;  %vm928_vm13 = vcmp.eq.s32.totalorder %v2643_v46, %v2603_v24 }
  0xce   : > { %v742_v2 = vpop.permute.xlu1 %741  ;;  %vm864_vm12 = vmor %vm2678_vm10, %vm848_vm1  ;;  %vm852_vm11 = vcmp.eq.s32.totalorder %v2643_v46, %v816_v60  ;;  %vm3392_vm10 = vcmp.eq.s32.totalorder %v2643_v46, %v2564_v63 }
  0xcf   : > { %331 = vperm.xlu1 %2117, %v2288_v7   ;;  %544 = vperm.xlu0 %2141, %v2467_v53   ;;  %vm2740_vm4 = vmor %vm707_vm9, %vm771_vm3 }
  0xd0   : > { %vm2748_vm0 = vmor %vm2701_vm2, %vm929_vm8  ;;  %vm774_vm2 = vcmp.eq.s32.totalorder %v2643_v46, %v742_v2 }
  0xd1   : > { %v2669_v7 = vpop.permute.xlu0 %827  ;;  %vm788_vm15 = vmor %vm3392_vm10, %vm772_vm5 }
  0xd2   : > { %vm2758_vm1 = vmor %vm864_vm12, %vm928_vm13  ;;  %vm710_vm12 = vcmp.eq.s32.totalorder %v2643_v46, %v2638_v47  ;;  %v3420_v47 = vld [vmem:[#allocation7_spill] sm:$0xff] }
  0xd3   : > { %2118 = vset.pattern.permute.xlu1 %v3370_v27  ;;  %v813_v20 = vpop.permute.xlu1 %812  ;;  %553 = vperm.xlu0 %2141, %v2479_v56   ;;  %vm2762_vm3 = vmor %vm788_vm15, %vm852_vm11 }
  0xd4   : > { %257 = vperm.xlu1 %2118, %v2268_v1   ;;  %vm851_vm5 = vcmp.eq.s32.totalorder %v2643_v46, %v813_v20  ;;  %vm2777_vm13 = vmor %vm710_vm12, %vm774_vm2  ;;  %v2159_v20 = vld [vmem:[%s3320_s1 + $0x38] sm:$0xff]  }
  0xd5   : > { %v2706_v33 = vpop.permute.xlu0 %839  ;;  %vm2787_vm15 = vmor %vm2740_vm4, %vm851_vm5 }
  0xd7   : > { %v819_v13 = vpop.permute.xlu1 %818  ;;  %556 = vperm.xlu0 %2141, %v2491_v59  }
  0xd8   : > { %2119 = vset.pattern.permute.xlu1 %v3371_v43 }
  0xd9   : > { %337 = vperm.xlu1 %2119, %v2296_v9   ;;  %v3397_v9 = vmov 2  }
  0xda   : > { %v881_v59 = vpop.permute.xlu0 %880 }
  0xdb   : > { %vm927_vm8 = vcmp.eq.s32.totalorder %v2643_v46, %v881_v59  ;;  %v822_v42 = vpop.permute.xlu1 %821  ;;  %565 = vperm.xlu0 %2141, %v2499_v61   ;;  %v2216_v61 = vmov 1.0|1.0  }
  0xdc   : > { %vm943_vm9 = vmor %vm2716_vm7, %vm927_vm8  ;;  %vm853_vm7 = vcmp.eq.s32.totalorder %v2643_v46, %v819_v13 }
  0xdd   : > { %2120 = vset.pattern.permute.xlu1 %v3397_v9  ;;  %vm1858_vm11 = vmpackc.low %vm2758_vm1, %vm943_vm9 }
  0xde   : > { %v890_v45 = vpop.permute.xlu0 %889  ;;  %424 = vperm.xlu1 %2120, %v2302_v11   ;;  %1976 = vmatprep.mubr.msk.bf16.mxu0 %vm1858_vm11, %v2216_v61  ;;  %v2153_v11 = vld [vmem:[%s3320_s1 + $0x8] sm:$0xff]   ;;  %vm2802_vm4 = vmor %vm2727_vm14, %vm853_vm7 }
  0xdf   : > { %vm930_vm10 = vcmp.eq.s32.totalorder %v2643_v46, %v890_v45  ;;  %2143 = vset.pattern.permute.xlu0 %v3368_v57 }
  0xe0   : > { %vm946_vm1 = vmor %vm2733_vm6, %vm930_vm10  ;;  %v896_v25 = vpop.permute.xlu1 %895  ;;  %vm854_vm6 = vcmp.eq.s32.totalorder %v2643_v46, %v822_v42  ;;  %v3412_v42 = vmov 0 }
  0xe1   : > { %vm1860_vm2 = vmpackc.low %vm946_vm1, %vm2748_vm0  ;;  %vm932_vm8 = vcmp.eq.s32.totalorder %v2643_v46, %v896_v25  ;;  %vm777_vm1 = vcmp.eq.s32.totalorder %v2643_v46, %v2629_v17 }
  0xe2   : > { %v893_v57 = vpop.permute.xlu0 %892  ;;  %430 = vperm.xlu1 %2120, %v2305_v12   ;;  %1977 = vmatmul.mubr.msk.bf16.vlgmr.msra.gmra.mrb[0].mxu0 %vm1860_vm2, %v2216_v61  ;;  %vm948_vm5 = vmor %vm2762_vm3, %vm932_vm8  ;;  %v2154_v12 = vld [vmem:[%s3320_s1 + $0x10] sm:$0xff]   ;;  %vm712_vm2 = vcmp.eq.s32.totalorder %v2643_v46, %v2577_v5 }
  0xe3   : > { %vm931_vm0 = vcmp.eq.s32.totalorder %v2643_v46, %v893_v57  ;;  %1993 = vmatpush3.bf16.msra.mxu0 %v2661_v4  ;;  %vm870_vm3 = vmor %vm2777_vm13, %vm854_vm6  ;;  %v2157_v4 = vld [vmem:[%s3320_s1 + $0x28] sm:$0xff]   ;;  %vm713_vm13 = vcmp.eq.s32.totalorder %v2643_v46, %v2587_v0 }
  0xe4   : > { %vm947_vm14 = vmor %vm2787_vm15, %vm931_vm0  ;;  %v899_v24 = vpop.permute.xlu1 %898  ;;  %1994 = vmatprep.subr.bf16.mxu0 %v2153_v11  ;;  %vm856_vm0 = vcmp.eq.s32.totalorder %v2643_v46, %v2669_v7 }
  0xe5   : > { %vm1862_vm9 = vmpackc.low %vm948_vm5, %vm947_vm14  ;;  %vm933_vm12 = vcmp.eq.s32.totalorder %v2643_v46, %v899_v24  ;;  %v3422_v24 = vld [vmem:[#allocation2_spill] sm:$0xff] }
  0xe6   : > { %v902_v31 = vpop.permute.xlu0 %901  ;;  %433 = vperm.xlu1 %2120, %v2321_v16   ;;  %1980 = vmatprep.mubr.msk.bf16.mxu0 %vm1862_vm9, %v2216_v61  ;;  %vm949_vm11 = vmor %vm2802_vm4, %vm933_vm12 }
  0xe7   : > { %vm934_vm7 = vcmp.eq.s32.totalorder %v2643_v46, %v902_v31  ;;  %1995 = vmatpush3.bf16.msra.mxu0 %v2153_v11  ;;  %vm2874_vm6 = vmor %vm713_vm13, %vm777_vm1  ;;  %v3421_v11 = vld [vmem:[#allocation8_spill] sm:$0xff] }
  0xe8   : > { %vm950_vm10 = vmor %vm870_vm3, %vm934_vm7  ;;  %1996 = vmatprep.subr.bf16.mxu0 %v2154_v12 }
  0xe9   : > { %vm1864_vm15 = vmpackc.low %vm950_vm10, %vm949_vm11  ;;  %v681_v34 = vpop.permute.xlu1 %680 }
  0xea   : > { %2121 = vset.pattern.permute.xlu1 %v3404_v37  ;;  %1981 = vmatmul.mubr.msk.bf16.gmra.mrb[4].mxu0 %vm1864_vm15, %v2216_v61  ;;  %v905_v16 = vpop.permute.xlu0 %904  ;;  %vm711_vm14 = vcmp.eq.s32.totalorder %v2643_v46, %v681_v34 }
  0xeb   : > { %523 = vperm.xlu1 %2121, %v2329_v18   ;;  %1997 = vmatpush3.bf16.msra.mxu0 %v2154_v12  ;;  %v2158_v18 = vld [vmem:[%s3320_s1 + $0x30] sm:$0xff]   ;;  %vm935_vm7 = vcmp.eq.s32.totalorder %v2643_v46, %v905_v16 }
  0xec   : > { %1998 = vmatprep.subr.bf16.mxu0 %v2155_v6 }
  0xee   : > { %v745_v19 = vpop.permute.xlu1 %744  ;;  %v2835_v2 = vpop.permute.xlu0 %913 }
  0xef   : > { %526 = vperm.xlu1 %2121, %v2338_v21   ;;  %1999 = vmatpush3.bf16.msra.mxu0 %v2155_v6  ;;  %vm775_vm4 = vcmp.eq.s32.totalorder %v2643_v46, %v745_v19  ;;  %v3423_v6 = vld [vmem:[#allocation9_spill] sm:$0xff] }
  0xf0   : > { %2000 = vmatprep.subr.bf16.mxu0 %v2156_v40  ;;  %vm791_vm12 = vmor %vm711_vm14, %vm775_vm4  ;;  %vm938_vm14 = vcmp.eq.s32.totalorder %v2643_v46, %v2835_v2 }
  0xf2   : > { %v748_v49 = vpop.permute.xlu1 %747  ;;  %v2841_v51 = vpop.permute.xlu0 %916 }
  0xf3   : > { %2122 = vset.pattern.permute.xlu1 %v3370_v27  ;;  %2001 = vmatpush3.bf16.msra.mxu0 %v2156_v40  ;;  %vm776_vm8 = vcmp.eq.s32.totalorder %v2643_v46, %v748_v49  ;;  %v3424_v40 = vld [vmem:[#allocation10_spill] sm:$0xff] }
  0xf4   : > { %260 = vperm.xlu1 %2122, %v2348_v23   ;;  %2002 = vmatprep.subr.bf16.mxu0 %v2157_v4  ;;  %vm792_vm9 = vmor %vm712_vm2, %vm776_vm8 }
  0xf5   : > { %vm872_vm13 = vmor %vm792_vm9, %vm856_vm0 }
  0xf6   : > { %v2848_v21 = vpop.permute.xlu0 %925 }
  0xf7   : > { %v690_v53 = vpop.permute.xlu1 %689  ;;  %2003 = vmatpush3.bf16.msra.mxu0 %v2157_v4  ;;  %v3425_v4 = vld [vmem:[#allocation3_spill] sm:$0xff] }
  0xf8   : > { %2123 = vset.pattern.permute.xlu1 %v3371_v43  ;;  %2004 = vmatprep.subr.bf16.mxu0 %v2158_v18  ;;  %vm714_vm10 = vcmp.eq.s32.totalorder %v2643_v46, %v690_v53 }
  0xf9   : > { %340 = vperm.xlu1 %2123, %v2360_v26  }
  0xfb   : > { %v2855_v10 = vpop.permute.xlu0 %251  ;;  %2005 = vmatpush3.bf16.msra.mxu0 %v2158_v18 }
  0xfc   : > { %v754_v23 = vpop.permute.xlu1 %753  ;;  %2006 = vmatprep.subr.bf16.mxu0 %v2159_v20 }
  0xfd   : > { %343 = vperm.xlu1 %2123, %v2372_v29   ;;  %vm778_vm3 = vcmp.eq.s32.totalorder %v2643_v46, %v754_v23  ;;  %v3432_v23 = vld [vmem:[#allocation14_spill] sm:$0xff] }
  0xfe   : > { %vm794_vm1 = vmor %vm714_vm10, %vm778_vm3 }
  0xff   : > { %v2858_v56 = vpop.permute.xlu0 %254  ;;  %2007 = vmatpush3.bf16.msra.mxu0 %v2159_v20 }
 0x101   : > { %2124 = vset.pattern.permute.xlu1 %v3370_v27  ;;  %v825_v1 = vpop.permute.xlu1 %824 }
 0x102   : > { %269 = vperm.xlu1 %2124, %v2383_v32   ;;  %v3405_v32 = vmov 0  ;;  %vm855_vm5 = vcmp.eq.s32.totalorder %v2643_v46, %v825_v1  ;;  %v3433_v1 = vld [vmem:[#allocation15_spill] sm:$0xff] }
 0x103   : > { %v2862_v30 = vpop.permute.xlu0 %263  ;;  %v3406_v32 = vsel %vm2874_vm6, 4294967295, %v3405_v32  ;;  %vm871_vm11 = vmor %vm791_vm12, %vm855_vm5 }
 0x104   : > { %vm951_vm2 = vmor %vm871_vm11, %vm935_vm7  ;;  %vm3407_vm0 = vnez %v3406_v32 }
 0x105   : > { %v831_v26 = vpop.permute.xlu1 %830 }
 0x106   : > { %2125 = vset.pattern.permute.xlu1 %v3371_v43  ;;  %vm857_vm8 = vcmp.eq.s32.totalorder %v2643_v46, %v831_v26 }
 0x107   : > { %349 = vperm.xlu1 %2125, %v2396_v35   ;;  %v267_v29 = vpop.permute.xlu0 %266  ;;  %vm873_vm9 = vmor %vm3407_vm0, %vm857_vm8  ;;  %vm781_vm0 = vcmp.eq.s32.totalorder %v2643_v46, %v2633_v8  ;;  %v3417_v8 = vld [vmem:[#allocation5_spill] sm:$0xff] }
 0x109   : > { %v834_v5 = vpop.permute.xlu1 %833 }
 0x10a   : > { %vm858_vm15 = vcmp.eq.s32.totalorder %v2643_v46, %v834_v5 }
 0x10b   : > { %2126 = vset.pattern.permute.xlu1 %v3397_v9  ;;  %v2885_v35 = vpop.permute.xlu0 %275  ;;  %vm874_vm4 = vmor %vm794_vm1, %vm858_vm15 }
 0x10c   : > { %436 = vperm.xlu1 %2126, %v2408_v38   ;;  %vm954_vm3 = vmor %vm874_vm4, %vm938_vm14 }
 0x10e   : > { %v908_v0 = vpop.permute.xlu1 %907 }
 0x10f   : > { %vm936_vm5 = vcmp.eq.s32.totalorder %v2643_v46, %v908_v0  ;;  %v279_v17 = vpop.permute.xlu0 %278 }
 0x110   : > { %vm952_vm12 = vmor %vm872_vm13, %vm936_vm5  ;;  %442 = vperm.xlu1 %2126, %v2420_v41   ;;  %vm305_vm13 = vcmp.eq.s32.totalorder %v2643_v46, %v279_v17 }
 0x111   : > { %vm1866_vm6 = vmpackc.low %vm952_vm12, %vm951_vm2  ;;  %vm717_vm12 = vcmp.eq.s32.totalorder %v2643_v46, %v2606_v22 }
 0x112   : > { %1984 = vmatprep.mubr.msk.bf16.mxu0 %vm1866_vm6, %v2216_v61  ;;  %v911_v38 = vpop.permute.xlu1 %910  ;;  %vm301_vm6 = vcmp.eq.s32.totalorder %v2643_v46, %v267_v29  ;;  %v3434_v29 = vld [vmem:[#allocation16_spill] sm:$0xff] }
 0x113   : > { %vm937_vm11 = vcmp.eq.s32.totalorder %v2643_v46, %v911_v38  ;;  %v2899_v7 = vpop.permute.xlu0 %287 }
 0x114   : > { %vm953_vm7 = vmor %vm873_vm9, %vm937_vm11  ;;  %445 = vperm.xlu1 %2126, %v2431_v44   ;;  %v3408_v44 = vmov 0  ;;  %vm716_vm9 = vcmp.eq.s32.totalorder %v2643_v46, %v2597_v3 }
 0x115   : > { %vm1868_vm10 = vmpackc.low %vm954_vm3, %vm953_vm7 }
 0x116   : > { %1985 = vmatmul.mubr.msk.bf16.gmra.mrb[8].mxu0 %vm1868_vm10, %v2216_v61  ;;  %vm2943_vm7 = vmor %vm717_vm12, %vm781_vm0 }
 0x117   : > { %v693_v13 = vpop.permute.xlu1 %692  ;;  %v291_v41 = vpop.permute.xlu0 %290 }
 0x118   : > { %2127 = vset.pattern.permute.xlu1 %v3404_v37  ;;  %vm309_vm4 = vcmp.eq.s32.totalorder %v2643_v46, %v291_v41 }
 0x119   : > { %535 = vperm.xlu1 %2127, %v2446_v48  }
 0x11c   : > { %v757_v36 = vpop.permute.xlu1 %756  ;;  %v2905_v15 = vpop.permute.xlu0 %334 }
 0x11d   : > { %538 = vperm.xlu1 %2127, %v2455_v50   ;;  %v3410_v50 = vmov 0  ;;  %vm779_vm11 = vcmp.eq.s32.totalorder %v2643_v46, %v757_v36 }
 0x120   : > { %v760_v14 = vpop.permute.xlu1 %759  ;;  %v347_v59 = vpop.permute.xlu0 %346 }
 0x121   : > { %2128 = vset.pattern.permute.xlu1 %v3370_v27  ;;  %vm381_vm15 = vcmp.eq.s32.totalorder %v2643_v46, %v347_v59  ;;  %vm780_vm3 = vcmp.eq.s32.totalorder %v2643_v46, %v760_v14 }
 0x122   : > { %272 = vperm.xlu1 %2128, %v2463_v52   ;;  %vm2913_vm1 = vmor %vm301_vm6, %vm381_vm15  ;;  %vm860_vm6 = vcmp.eq.s32.totalorder %v2643_v46, %v2706_v33  ;;  %vm715_vm15 = vcmp.eq.s32.totalorder %v2643_v46, %v693_v13  ;;  %v3419_v33 = vld [vmem:[#allocation6_spill] sm:$0xff] }
 0x123   : > { %v3409_v44 = vsel %vm2913_vm1, 4294967295, %v3408_v44 }
 0x124   : > { %v359_v48 = vpop.permute.xlu0 %358 }
 0x125   : > { %v702_v60 = vpop.permute.xlu1 %701  ;;  %vm385_vm2 = vcmp.eq.s32.totalorder %v2643_v46, %v359_v48 }
 0x126   : > { %2129 = vset.pattern.permute.xlu1 %v3371_v43  ;;  %vm2919_vm8 = vmor %vm305_vm13, %vm385_vm2  ;;  %vm718_vm12 = vcmp.eq.s32.totalorder %v2643_v46, %v702_v60 }
 0x127   : > { %v3411_v50 = vsel %vm2919_vm8, 4294967295, %v3410_v50  ;;  %352 = vperm.xlu1 %2129, %v2475_v55   ;;  %vm796_vm13 = vmor %vm716_vm9, %vm780_vm3 }
 0x128   : > { %v371_v52 = vpop.permute.xlu0 %370  ;;  %vm795_vm2 = vmor %vm715_vm15, %vm779_vm11 }
 0x129   : > { %vm389_vm5 = vcmp.eq.s32.totalorder %v2643_v46, %v371_v52  ;;  %vm876_vm8 = vmor %vm796_vm13, %vm860_vm6 }
 0x12a   : > { %v766_v39 = vpop.permute.xlu1 %765  ;;  %vm2926_vm14 = vmor %vm309_vm4, %vm389_vm5  ;;  %vm939_vm5 = vcmp.eq.s32.totalorder %v2643_v46, %v2841_v51  ;;  %v3427_v51 = vmov 0 }
 0x12b   : > { %v3413_v42 = vsel %vm2926_vm14, 4294967295, %v3412_v42  ;;  %355 = vperm.xlu1 %2129, %v2487_v58   ;;  %vm782_vm4 = vcmp.eq.s32.totalorder %v2643_v46, %v766_v39 }
 0x12c   : > { %vm798_vm1 = vmor %vm718_vm12, %vm782_vm4  ;;  %vm296_vm12 = vcmp.eq.s32.totalorder %v2643_v46, %v2855_v10 }
 0x12d   : > { %v428_v28 = vpop.permute.xlu0 %427 }
 0x12f   : > { %2130 = vset.pattern.permute.xlu1 %v3370_v27  ;;  %v837_v63 = vpop.permute.xlu1 %836 }
 0x130   : > { %281 = vperm.xlu1 %2130, %v2472_v54   ;;  %v3414_v54 = vmov 0  ;;  %vm859_vm10 = vcmp.eq.s32.totalorder %v2643_v46, %v837_v63 }
 0x131   : > { %v3415_v54 = vsel %vm2943_vm7, 4294967295, %v3414_v54  ;;  %vm875_vm14 = vmor %vm795_vm2, %vm859_vm10  ;;  %vm942_vm10 = vcmp.eq.s32.totalorder %v2643_v46, %v2848_v21  ;;  %v2974_v12 = vpop.permute.xlu0 %439 }
 0x132   : > { %vm955_vm7 = vmor %vm875_vm14, %vm939_vm5  ;;  %vm3418_vm6 = vnez %v3415_v54 }
 0x133   : > { %v843_v55 = vpop.permute.xlu1 %842 }
 0x134   : > { %2131 = vset.pattern.permute.xlu1 %v3371_v43  ;;  %vm861_vm9 = vcmp.eq.s32.totalorder %v2643_v46, %v843_v55 }
 0x135   : > { %361 = vperm.xlu1 %2131, %v2505_v62   ;;  %v3416_v62 = vld [vmem:[#allocation4_spill] sm:$0xff]  ;;  %vm877_vm13 = vmor %vm3418_vm6, %vm861_vm9  ;;  %v2978_v34 = vpop.permute.xlu0 %451 }
 0x137   : > { %v846_v58 = vpop.permute.xlu1 %845 }
 0x138   : > { %vm862_vm0 = vcmp.eq.s32.totalorder %v2643_v46, %v846_v58 }
 0x139   : > { %2132 = vset.pattern.permute.xlu1 %v3397_v9  ;;  %vm878_vm3 = vmor %vm798_vm1, %vm862_vm0  ;;  %v2982_v2 = vpop.permute.xlu0 %463 }
 0x13a   : > { %448 = vperm.xlu1 %2132, %v3416_v62   ;;  %vm958_vm14 = vmor %vm878_vm3, %vm942_vm10 }
 0x13c   : > { %v920_v3 = vpop.permute.xlu1 %919 }
 0x13d   : > { %vm940_vm11 = vcmp.eq.s32.totalorder %v2643_v46, %v920_v3 }
 0x13e   : > { %vm956_vm15 = vmor %vm876_vm8, %vm940_vm11  ;;  %454 = vperm.xlu1 %2132, %v3417_v8   ;;  %vm297_vm8 = vcmp.eq.s32.totalorder %v2643_v46, %v2858_v56  ;;  %v521_v18 = vpop.permute.xlu0 %520 }
 0x13f   : > { %vm1870_vm2 = vmpackc.low %vm956_vm15, %vm955_vm7  ;;  %vm377_vm7 = vcmp.eq.s32.totalorder %v2643_v46, %v2905_v15  ;;  %vm472_vm15 = vcmp.eq.s32.totalorder %v2643_v46, %v428_v28 }
 0x140   : > { %1988 = vmatprep.mubr.msk.bf16.mxu0 %vm1870_vm2, %v2216_v61  ;;  %v923_v22 = vpop.permute.xlu1 %922  ;;  %vm2995_vm3 = vmor %vm297_vm8, %vm377_vm7 }
 0x141   : > { %vm941_vm4 = vcmp.eq.s32.totalorder %v2643_v46, %v923_v22  ;;  %v3428_v51 = vsel %vm2995_vm3, 4294967295, %v3427_v51 }
 0x142   : > { %vm957_vm5 = vmor %vm877_vm13, %vm941_vm4  ;;  %457 = vperm.xlu1 %2132, %v3419_v33   ;;  %vm567_vm4 = vcmp.eq.s32.totalorder %v2643_v46, %v521_v18  ;;  %v530_v53 = vpop.permute.xlu0 %529 }
 0x143   : > { %vm1872_vm1 = vmpackc.low %vm958_vm14, %vm957_vm5 }
 0x144   : > { %1989 = vmatmul.mubr.msk.bf16.gmra.mrb[12].mxu0 %vm1872_vm1, %v2216_v61 }
 0x145   : > { %v249_v45 = vpop.permute.xlu1 %248 }
 0x146   : > { %2133 = vset.pattern.permute.xlu1 %v3404_v37  ;;  %vm295_vm10 = vcmp.eq.s32.totalorder %v2643_v46, %v249_v45 }
 0x147   : > { %547 = vperm.xlu1 %2133, %v3420_v47  }
 0x14a   : > { %v329_v25 = vpop.permute.xlu1 %328 }
 0x14b   : > { %550 = vperm.xlu1 %2133, %v3421_v11   ;;  %vm375_vm9 = vcmp.eq.s32.totalorder %v2643_v46, %v329_v25 }
 0x14c   : > { %vm391_vm6 = vmor %vm295_vm10, %vm375_vm9 }
 0x14e   : > { %v332_v57 = vpop.permute.xlu1 %331 }
 0x14f   : > { %2134 = vset.pattern.permute.xlu1 %v3370_v27  ;;  %vm376_vm0 = vcmp.eq.s32.totalorder %v2643_v46, %v332_v57 }
 0x150   : > { %284 = vperm.xlu1 %2134, %v3422_v24   ;;  %vm392_vm2 = vmor %vm296_vm12, %vm376_vm0  ;;  %v1898_v24 = vld [vmem:[%s3321_s2] ss:$0 sm:$0xff] }
 0x151   : > { %vm488_vm8 = vmor %vm392_vm2, %vm472_vm15  ;;  %vm3431_vm2 = vnez %v3428_v51 }
 0x153   : > { %v258_v31 = vpop.permute.xlu1 %257 }
 0x154   : > { %2135 = vset.pattern.permute.xlu1 %v3371_v43  ;;  %vm298_vm5 = vcmp.eq.s32.totalorder %v2643_v46, %v258_v31 }
 0x155   : > { %364 = vperm.xlu1 %2135, %v3423_v6  }
 0x158   : > { %v338_v16 = vpop.permute.xlu1 %337 }
 0x159   : > { %367 = vperm.xlu1 %2135, %v3424_v40   ;;  %vm378_vm13 = vcmp.eq.s32.totalorder %v2643_v46, %v338_v16 }
 0x15a   : > { %vm394_vm7 = vmor %vm298_vm5, %vm378_vm13 }
 0x15d   : > { %2137 = vset.pattern.permute.xlu1 %v3370_v27  ;;  %v425_v19 = vpop.permute.xlu1 %424  ;;  %v3426_v27 = vld [vmem:[#allocation11_spill] sm:$0xff] }
 0x15e   : > { %293 = vperm.xlu1 %2137, %v3425_v4   ;;  %vm471_vm11 = vcmp.eq.s32.totalorder %v2643_v46, %v425_v19 }
 0x15f   : > { %vm487_vm14 = vmor %vm391_vm6, %vm471_vm11  ;;  %vm570_vm11 = vcmp.eq.s32.totalorder %v2643_v46, %v530_v53 }
 0x160   : > { %vm583_vm3 = vmor %vm487_vm14, %vm567_vm4 }
 0x161   : > { %v431_v49 = vpop.permute.xlu1 %430 }
 0x162   : > { %2139 = vset.pattern.permute.xlu1 %v3371_v43  ;;  %v3429_v43 = vld [vmem:[#allocation12_spill] sm:$0xff]  ;;  %vm473_vm12 = vcmp.eq.s32.totalorder %v2643_v46, %v431_v49 }
 0x163   : > { %373 = vperm.xlu1 %2139, %v3426_v27   ;;  %vm489_vm15 = vmor %vm3431_vm2, %vm473_vm12  ;;  %vm476_vm12 = vcmp.eq.s32.totalorder %v2643_v46, %v2974_v12 }
 0x165   : > { %v434_v21 = vpop.permute.xlu1 %433 }
 0x166   : > { %vm474_vm1 = vcmp.eq.s32.totalorder %v2643_v46, %v434_v21 }
 0x167   : > { %2140 = vset.pattern.permute.xlu1 %v3397_v9  ;;  %vm490_vm0 = vmor %vm394_vm7, %vm474_vm1  ;;  %v3430_v9 = vld [vmem:[#allocation13_spill] sm:$0xff] }
 0x168   : > { %460 = vperm.xlu1 %2140, %v3429_v43   ;;  %vm586_vm13 = vmor %vm490_vm0, %vm570_vm11 }
 0x16a   : > { %v524_v20 = vpop.permute.xlu1 %523 }
 0x16b   : > { %vm568_vm9 = vcmp.eq.s32.totalorder %v2643_v46, %v524_v20 }
 0x16c   : > { %vm584_vm10 = vmor %vm488_vm8, %vm568_vm9  ;;  %466 = vperm.xlu1 %2140, %v3430_v9  }
 0x16d   : > { %vm1882_vm6 = vmpackc.low %vm584_vm10, %vm583_vm3  ;;  %vm300_vm3 = vcmp.eq.s32.totalorder %v2643_v46, %v2862_v30 }
 0x16e   : > { %2008 = vmatprep.mubr.msk.bf16.mxu0 %vm1882_vm6, %v2216_v61  ;;  %v527_v10 = vpop.permute.xlu1 %526 }
 0x16f   : > { %vm569_vm14 = vcmp.eq.s32.totalorder %v2643_v46, %v527_v10 }
 0x170   : > { %vm585_vm4 = vmor %vm489_vm15, %vm569_vm14  ;;  %469 = vperm.xlu1 %2140, %v3432_v23  }
 0x171   : > { %vm1884_vm5 = vmpackc.low %vm586_vm13, %vm585_vm4 }
 0x172   : > { %2009 = vmatmul.mubr.msk.bf16.vlgmr.msra.gmra.mrb[0].mxu0 %vm1884_vm5, %v2216_v61 }
 0x173   : > { %v261_v56 = vpop.permute.xlu1 %260 }
 0x174   : > { %2142 = vset.pattern.permute.xlu1 %v3404_v37  ;;  %v533_v37 = vpop.permute.xlu0 %532  ;;  %vm299_vm0 = vcmp.eq.s32.totalorder %v2643_v46, %v261_v56 }
 0x175   : > { %559 = vperm.xlu1 %2142, %v3433_v1   ;;  %vm571_vm2 = vcmp.eq.s32.totalorder %v2643_v46, %v533_v37 }
 0x178   : > { %v341_v26 = vpop.permute.xlu1 %340  ;;  %v542_v30 = vpop.permute.xlu0 %541 }
 0x179   : > { %562 = vperm.xlu1 %2142, %v3434_v29   ;;  %vm379_vm8 = vcmp.eq.s32.totalorder %v2643_v46, %v341_v26 }
 0x17a   : > { %vm395_vm11 = vmor %vm299_vm0, %vm379_vm8  ;;  %vm574_vm8 = vcmp.eq.s32.totalorder %v2643_v46, %v542_v30 }
 0x17c   : > { %v344_v32 = vpop.permute.xlu1 %343  ;;  %v545_v63 = vpop.permute.xlu0 %544 }
 0x17d   : > { %vm380_vm1 = vcmp.eq.s32.totalorder %v2643_v46, %v344_v32 }
 0x17e   : > { %vm396_vm9 = vmor %vm300_vm3, %vm380_vm1 }
 0x17f   : > { %vm492_vm14 = vmor %vm396_vm9, %vm476_vm12  ;;  %vm3435_vm9 = vnez %v3409_v44 }
 0x181   : > { %v270_v5 = vpop.permute.xlu1 %269 }
 0x182   : > { %vm302_vm15 = vcmp.eq.s32.totalorder %v2643_v46, %v270_v5 }
 0x186   : > { %v350_v0 = vpop.permute.xlu1 %349 }
 0x187   : > { %vm382_vm10 = vcmp.eq.s32.totalorder %v2643_v46, %v350_v0 }
 0x188   : > { %vm398_vm4 = vmor %vm302_vm15, %vm382_vm10 }
 0x18b   : > { %v437_v17 = vpop.permute.xlu1 %436 }
 0x18c   : > { %vm475_vm7 = vcmp.eq.s32.totalorder %v2643_v46, %v437_v17 }
 0x18d   : > { %vm491_vm6 = vmor %vm395_vm11, %vm475_vm7 }
 0x18e   : > { %vm587_vm5 = vmor %vm491_vm6, %vm571_vm2 }
 0x18f   : > { %v443_v38 = vpop.permute.xlu1 %442 }
 0x190   : > { %vm477_vm1 = vcmp.eq.s32.totalorder %v2643_v46, %v443_v38 }
 0x191   : > { %vm493_vm12 = vmor %vm3435_vm9, %vm477_vm1 }
 0x193   : > { %v446_v13 = vpop.permute.xlu1 %445 }
 0x194   : > { %vm478_vm13 = vcmp.eq.s32.totalorder %v2643_v46, %v446_v13 }
 0x195   : > { %vm494_vm3 = vmor %vm398_vm4, %vm478_vm13  ;;  %vm480_vm13 = vcmp.eq.s32.totalorder %v2643_v46, %v2978_v34 }
 0x196   : > { %vm590_vm10 = vmor %vm494_vm3, %vm574_vm8 }
 0x198   : > { %v536_v41 = vpop.permute.xlu1 %535 }
 0x199   : > { %vm572_vm0 = vcmp.eq.s32.totalorder %v2643_v46, %v536_v41 }
 0x19a   : > { %vm588_vm7 = vmor %vm492_vm14, %vm572_vm0  ;;  %vm304_vm14 = vcmp.eq.s32.totalorder %v2643_v46, %v2885_v35  ;;  %v554_v35 = vpop.permute.xlu0 %553 }
 0x19b   : > { %vm1886_vm11 = vmpackc.low %vm588_vm7, %vm587_vm5 }
 0x19c   : > { %2012 = vmatprep.mubr.msk.bf16.mxu0 %vm1886_vm11, %v2216_v61  ;;  %v539_v36 = vpop.permute.xlu1 %538 }
 0x19d   : > { %vm573_vm15 = vcmp.eq.s32.totalorder %v2643_v46, %v539_v36 }
 0x19e   : > { %vm589_vm6 = vmor %vm493_vm12, %vm573_vm15  ;;  %vm575_vm12 = vcmp.eq.s32.totalorder %v2643_v46, %v545_v63 }
 0x19f   : > { %vm1888_vm2 = vmpackc.low %vm590_vm10, %vm589_vm6 }
 0x1a0   : > { %2013 = vmatmul.mubr.msk.bf16.gmra.mrb[4].mxu0 %vm1888_vm2, %v2216_v61 }
 0x1a1   : > { %v273_v15 = vpop.permute.xlu1 %272 }
 0x1a2   : > { %vm303_vm8 = vcmp.eq.s32.totalorder %v2643_v46, %v273_v15 }
 0x1a6   : > { %v353_v14 = vpop.permute.xlu1 %352 }
 0x1a7   : > { %vm383_vm3 = vcmp.eq.s32.totalorder %v2643_v46, %v353_v14 }
 0x1a8   : > { %vm399_vm7 = vmor %vm303_vm8, %vm383_vm3  ;;  %vm3438_vm8 = vnez %v3411_v50  ;;  %v2165_v50 = vld [vmem:[%s3322_s3 + $0x28] sm:$0xff]  }
 0x1aa   : > { %v356_v59 = vpop.permute.xlu1 %355 }
 0x1ab   : > { %vm384_vm4 = vcmp.eq.s32.totalorder %v2643_v46, %v356_v59 }
 0x1ac   : > { %vm400_vm5 = vmor %vm304_vm14, %vm384_vm4 }
 0x1ad   : > { %vm3046_vm1 = vmor %vm400_vm5, %vm480_vm13  ;;  %vm578_vm5 = vcmp.eq.s32.totalorder %v2643_v46, %v554_v35 }
 0x1af   : > { %v282_v48 = vpop.permute.xlu1 %281 }
 0x1b0   : > { %vm306_vm10 = vcmp.eq.s32.totalorder %v2643_v46, %v282_v48 }
 0x1b4   : > { %v362_v60 = vpop.permute.xlu1 %361 }
 0x1b5   : > { %vm386_vm11 = vcmp.eq.s32.totalorder %v2643_v46, %v362_v60 }
 0x1b6   : > { %vm402_vm6 = vmor %vm306_vm10, %vm386_vm11 }
 0x1b9   : > { %v449_v52 = vpop.permute.xlu1 %448 }
 0x1ba   : > { %vm479_vm0 = vcmp.eq.s32.totalorder %v2643_v46, %v449_v52 }
 0x1bb   : > { %vm495_vm9 = vmor %vm399_vm7, %vm479_vm0 }
 0x1bc   : > { %vm591_vm2 = vmor %vm495_vm9, %vm575_vm12 }
 0x1bd   : > { %v455_v39 = vpop.permute.xlu1 %454 }
 0x1be   : > { %vm481_vm13 = vcmp.eq.s32.totalorder %v2643_v46, %v455_v39 }
 0x1bf   : > { %vm497_vm7 = vmor %vm3438_vm8, %vm481_vm13 }
 0x1c1   : > { %v458_v55 = vpop.permute.xlu1 %457 }
 0x1c2   : > { %vm482_vm15 = vcmp.eq.s32.totalorder %v2643_v46, %v458_v55 }
 0x1c3   : > { %vm498_vm14 = vmor %vm402_vm6, %vm482_vm15  ;;  %vm484_vm6 = vcmp.eq.s32.totalorder %v2643_v46, %v2982_v2 }
 0x1c4   : > { %vm594_vm11 = vmor %vm498_vm14, %vm578_vm5 }
 0x1c6   : > { %v548_v54 = vpop.permute.xlu1 %547 }
 0x1c7   : > { %vm576_vm4 = vcmp.eq.s32.totalorder %v2643_v46, %v548_v54  ;;  %v2160_v54 = vld [vmem:[%s3322_s3] sm:$0xff]  }
 0x1c8   : > { %vm592_vm3 = vmor %vm3046_vm1, %vm576_vm4  ;;  %vm308_vm1 = vcmp.eq.s32.totalorder %v2643_v46, %v2899_v7  ;;  %v557_v7 = vpop.permute.xlu0 %556  ;;  %2024 = vmatprep.subr.bf16.mxu1 %v2160_v54 }
 0x1c9   : > { %vm1890_vm0 = vmpackc.low %vm592_vm3, %vm591_vm2  ;;  %2025 = vmatpush3.bf16.msra.mxu1 %v2160_v54 }
 0x1ca   : > { %2016 = vmatprep.mubr.msk.bf16.mxu0 %vm1890_vm0, %v2216_v61  ;;  %v551_v58 = vpop.permute.xlu1 %550 }
 0x1cb   : > { %vm577_vm9 = vcmp.eq.s32.totalorder %v2643_v46, %v551_v58  ;;  %v2161_v58 = vld [vmem:[%s3322_s3 + $0x8] sm:$0xff]  }
 0x1cc   : > { %vm593_vm12 = vmor %vm497_vm7, %vm577_vm9  ;;  %vm579_vm9 = vcmp.eq.s32.totalorder %v2643_v46, %v557_v7  ;;  %v566_v28 = vpop.permute.xlu0 %565  ;;  %2026 = vmatprep.subr.bf16.mxu1 %v2161_v58 }
 0x1cd   : > { %vm1892_vm10 = vmpackc.low %vm594_vm11, %vm593_vm12  ;;  %2027 = vmatpush3.bf16.msra.mxu1 %v2161_v58 }
 0x1ce   : > { %2017 = vmatmul.mubr.msk.bf16.gmra.mrb[8].mxu0 %vm1892_vm10, %v2216_v61 }
 0x1cf   : > { %v285_v62 = vpop.permute.xlu1 %284 }
 0x1d0   : > { %vm307_vm5 = vcmp.eq.s32.totalorder %v2643_v46, %v285_v62  ;;  %v2162_v62 = vld [vmem:[%s3322_s3 + $0x10] sm:$0xff]  }
 0x1d1   : > { %2028 = vmatprep.subr.bf16.mxu1 %v2162_v62 }
 0x1d2   : > { %2029 = vmatpush3.bf16.msra.mxu1 %v2162_v62 }
 0x1d4   : > { %v365_v3 = vpop.permute.xlu1 %364 }
 0x1d5   : > { %vm387_vm14 = vcmp.eq.s32.totalorder %v2643_v46, %v365_v3  ;;  %v2163_v3 = vld [vmem:[%s3322_s3 + $0x18] sm:$0xff]  }
 0x1d6   : > { %vm403_vm3 = vmor %vm307_vm5, %vm387_vm14  ;;  %vm3441_vm5 = vnez %v3413_v42  ;;  %2030 = vmatprep.subr.bf16.mxu1 %v2163_v3 }
 0x1d7   : > { %2031 = vmatpush3.bf16.msra.mxu1 %v2163_v3 }
 0x1d8   : > { %v368_v8 = vpop.permute.xlu1 %367 }
 0x1d9   : > { %vm388_vm15 = vcmp.eq.s32.totalorder %v2643_v46, %v368_v8  ;;  %v2164_v8 = vld [vmem:[%s3322_s3 + $0x20] sm:$0xff]  }
 0x1da   : > { %vm404_vm2 = vmor %vm308_vm1, %vm388_vm15  ;;  %2032 = vmatprep.subr.bf16.mxu1 %v2164_v8 }
 0x1db   : > { %vm3072_vm13 = vmor %vm404_vm2, %vm484_vm6  ;;  %2033 = vmatpush3.bf16.msra.mxu1 %v2164_v8 }
 0x1dc   : > { %2034 = vmatprep.subr.bf16.mxu1 %v2165_v50 }
 0x1dd   : > { %v294_v22 = vpop.permute.xlu1 %293 }
 0x1de   : > { %vm310_vm7 = vcmp.eq.s32.totalorder %v2643_v46, %v294_v22  ;;  %v2166_v22 = vld [vmem:[%s3322_s3 + $0x30] sm:$0xff]  }
 0x1df   : > { %2035 = vmatpush3.bf16.msra.mxu1 %v2165_v50 }
 0x1e0   : > { %2036 = vmatprep.subr.bf16.mxu1 %v2166_v22 }
 0x1e2   : > { %v374_v33 = vpop.permute.xlu1 %373 }
 0x1e3   : > { %vm390_vm0 = vcmp.eq.s32.totalorder %v2643_v46, %v374_v33  ;;  %v2167_v33 = vld [vmem:[%s3322_s3 + $0x38] sm:$0xff]   ;;  %2037 = vmatpush3.bf16.msra.mxu1 %v2166_v22 }
 0x1e4   : > { %vm406_vm12 = vmor %vm310_vm7, %vm390_vm0  ;;  %2038 = vmatprep.subr.bf16.mxu1 %v2167_v33 }
 0x1e7   : > { %v461_v45 = vpop.permute.xlu1 %460  ;;  %2039 = vmatpush3.bf16.msra.mxu1 %v2167_v33 }
 0x1e8   : > { %vm483_vm4 = vcmp.eq.s32.totalorder %v2643_v46, %v461_v45 }
 0x1e9   : > { %vm499_vm8 = vmor %vm403_vm3, %vm483_vm4  ;;  %vm582_vm4 = vcmp.eq.s32.totalorder %v2643_v46, %v566_v28 }
 0x1ea   : > { %vm595_vm10 = vmor %vm499_vm8, %vm579_vm9 }
 0x1eb   : > { %v467_v47 = vpop.permute.xlu1 %466 }
 0x1ec   : > { %vm485_vm1 = vcmp.eq.s32.totalorder %v2643_v46, %v467_v47 }
 0x1ed   : > { %vm501_vm3 = vmor %vm3441_vm5, %vm485_vm1 }
 0x1ef   : > { %v470_v25 = vpop.permute.xlu1 %469 }
 0x1f0   : > { %vm486_vm11 = vcmp.eq.s32.totalorder %v2643_v46, %v470_v25 }
 0x1f1   : > { %vm502_vm15 = vmor %vm406_vm12, %vm486_vm11 }
 0x1f2   : > { %vm598_vm0 = vmor %vm502_vm15, %vm582_vm4 }
 0x1f4   : > { %v560_v11 = vpop.permute.xlu1 %559 }
 0x1f5   : > { %vm580_vm6 = vcmp.eq.s32.totalorder %v2643_v46, %v560_v11 }
 0x1f6   : > { %vm596_vm2 = vmor %vm3072_vm13, %vm580_vm6 }
 0x1f7   : > { %vm1894_vm14 = vmpackc.low %vm596_vm2, %vm595_vm10 }
 0x1f8   : > { %2020 = vmatprep.mubr.msk.bf16.mxu0 %vm1894_vm14, %v2216_v61  ;;  %v563_v57 = vpop.permute.xlu1 %562 }
 0x1f9   : > { %vm581_vm8 = vcmp.eq.s32.totalorder %v2643_v46, %v563_v57 }
 0x1fa   : > { %vm597_vm7 = vmor %vm501_vm3, %vm581_vm8 }
 0x1fb   : > { %vm1896_vm9 = vmpackc.low %vm598_vm0, %vm597_vm7 }
 0x1fc   : > { %2021 = vmatmul.mubr.msk.bf16.gmra.mrb[12].mxu0 %vm1896_vm9, %v2216_v61 }
 0x245   : > { %v2010_v12 = vpop.f32.mrb[0].mxu0 }
 0x246   : > { %v1242_v31 = vpop.f32.mrb[1].mxu0  ;;  %v1312_v19 = vadd.f32 %v2010_v12, %v1898_v24 }
 0x247   : > { %v1310_v6 = vadd.f32 %v1898_v24, %v1242_v31  ;;  %v2011_v34 = vpop.f32.mrb[2].mxu0 }
 0x248   : > { %v1245_v42 = vpop.f32.mrb[3].mxu0  ;;  %v1313_v40 = vadd.f32 %v2011_v34, %v1898_v24 }
 0x249   : > { %v1311_v16 = vadd.f32 %v1898_v24, %v1245_v42  ;;  %1326 = vadd.xlane.f32.xlu1 %v1310_v6 }
 0x24b   : > { %1328 = vadd.xlane.f32.xlu0 %v1311_v16 }
 0x24d   : > { %1332 = vadd.xlane.f32.xlu1 %v1313_v40 }
 0x24f   : > { %1330 = vadd.xlane.f32.xlu0 %v1312_v19 }
 0x273   : > { %v2014_v46 = vpop.f32.mrb[4].mxu0 }
 0x274   : > { %v1258_v2 = vpop.f32.mrb[5].mxu0  ;;  %v3101_v51 = vadd.f32 %v2014_v46, %v1898_v24 }
 0x275   : > { %v3096_v4 = vadd.f32 %v1898_v24, %v1258_v2  ;;  %v2015_v61 = vpop.f32.mrb[6].mxu0 }
 0x276   : > { %v1261_v49 = vpop.f32.mrb[7].mxu0  ;;  %v3104_v18 = vadd.f32 %v2015_v61, %v1898_v24 }
 0x277   : > { %v3098_v27 = vadd.f32 %v1898_v24, %v1261_v49  ;;  %1334 = vadd.xlane.f32.xlu0 %v3096_v4 }
 0x279   : > { %1336 = vadd.xlane.f32.xlu1 %v3098_v27 }
 0x27b   : > { %1338 = vadd.xlane.f32.xlu0 %v3101_v51 }
 0x27d   : > { %1340 = vadd.xlane.f32.xlu1 %v3104_v18 }
 0x2a1   : > { %v2018_v21 = vpop.f32.mrb[8].mxu0 }
 0x2a2   : > { %v1274_v43 = vpop.f32.mrb[9].mxu0  ;;  %v3113_v23 = vadd.f32 %v2018_v21, %v1898_v24 }
 0x2a3   : > { %v3108_v53 = vadd.f32 %v1898_v24, %v1274_v43  ;;  %v2019_v20 = vpop.f32.mrb[10].mxu0 }
 0x2a4   : > { %v1277_v9 = vpop.f32.mrb[11].mxu0  ;;  %v3116_v56 = vadd.f32 %v2019_v20, %v1898_v24 }
 0x2a5   : > { %v3110_v10 = vadd.f32 %v1898_v24, %v1277_v9  ;;  %1342 = vadd.xlane.f32.xlu0 %v3108_v53 }
 0x2a7   : > { %1344 = vadd.xlane.f32.xlu1 %v3110_v10 }
 0x2a9   : > { %1346 = vadd.xlane.f32.xlu0 %v3113_v23 }
 0x2ab   : > { %1348 = vadd.xlane.f32.xlu1 %v3116_v56 }
 0x2cf   : > { %v2022_v1 = vpop.f32.mrb[12].mxu0 }
 0x2d0   : > { %v1290_v26 = vpop.f32.mrb[13].mxu0  ;;  %v3125_v17 = vadd.f32 %v2022_v1, %v1898_v24 }
 0x2d1   : > { %v3120_v29 = vadd.f32 %v1898_v24, %v1290_v26  ;;  %v2023_v32 = vpop.f32.mrb[14].mxu0 }
 0x2d2   : > { %v1293_v5 = vpop.f32.mrb[15].mxu0  ;;  %v3128_v37 = vadd.f32 %v2023_v32, %v1898_v24 }
 0x2d3   : > { %v3122_v0 = vadd.f32 %v1898_v24, %v1293_v5  ;;  %1350 = vadd.xlane.f32.xlu0 %v3120_v29 }
 0x2d5   : > { %1352 = vadd.xlane.f32.xlu1 %v3122_v0 }
 0x2d6   : > { %v1327_v38 = vpop.xlane.xlu1 %1326 }
 0x2d7   : > { %v1359_v13 = vmul.f32 0.0078125, %v1327_v38  ;;  %1354 = vadd.xlane.f32.xlu0 %v3125_v17 }
 0x2d8   : > { %v1329_v30 = vpop.xlane.xlu0 %1328 }
 0x2d9   : > { %v3131_v41 = vsub.f32 %v1310_v6, %v1359_v13  ;;  %v1360_v36 = vmul.f32 0.0078125, %v1329_v30  ;;  %1356 = vadd.xlane.f32.xlu1 %v3128_v37 }
 0x2da   : > { %v1333_v15 = vpop.xlane.xlu1 %1332 }
 0x2db   : > { %v3134_v14 = vsub.f32 %v1311_v16, %v1360_v36  ;;  %v1362_v59 = vmul.f32 0.0078125, %v1333_v15  ;;  %v1391_v44 = vmul.f32 %v3131_v41, %v3131_v41 }
 0x2dc   : > { %v1331_v48 = vpop.xlane.xlu0 %1330 }
 0x2dd   : > { %v3138_v60 = vsub.f32 %v1313_v40, %v1362_v59  ;;  %v1361_v52 = vmul.f32 0.0078125, %v1331_v48  ;;  %1407 = vadd.xlane.f32.xlu0 %v1391_v44  ;;  %v1392_v39 = vmul.f32 %v3134_v14, %v3134_v14 }
 0x2df   : > { %v3142_v63 = vsub.f32 %v1312_v19, %v1361_v52  ;;  %1409 = vadd.xlane.f32.xlu1 %v1392_v39  ;;  %v1394_v35 = vmul.f32 %v3138_v60, %v3138_v60 }
 0x2e1   : > { %v1393_v55 = vmul.f32 %v3142_v63, %v3142_v63 }
 0x2e3   : > { %1411 = vadd.xlane.f32.xlu0 %v1393_v55  ;;  %1413 = vadd.xlane.f32.xlu1 %v1394_v35 }
 0x304   : > { %v1335_v45 = vpop.xlane.xlu0 %1334 }
 0x305   : > { %v1363_v47 = vmul.f32 0.0078125, %v1335_v45 }
 0x306   : > { %v1337_v7 = vpop.xlane.xlu1 %1336 }
 0x307   : > { %v3173_v25 = vsub.f32 %v3096_v4, %v1363_v47  ;;  %v1364_v11 = vmul.f32 0.0078125, %v1337_v7  ;;  %v3235_v47 = vld [vmem:[%s3321_s2 + $0x1] ss:$0 sm:$0xff] }
 0x308   : > { %v1339_v28 = vpop.xlane.xlu0 %1338 }
 0x309   : > { %v3176_v57 = vsub.f32 %v3098_v27, %v1364_v11  ;;  %v1365_v24 = vmul.f32 0.0078125, %v1339_v28  ;;  %v1395_v12 = vmul.f32 %v3173_v25, %v3173_v25  ;;  %v3241_v28 = vld [vmem:[%s3321_s2 + $0x2] ss:$0 sm:$0xff] }
 0x30a   : > { %v1341_v31 = vpop.xlane.xlu1 %1340 }
 0x30b   : > { %v3181_v6 = vsub.f32 %v3101_v51, %v1365_v24  ;;  %v1366_v34 = vmul.f32 0.0078125, %v1341_v31  ;;  %1415 = vadd.xlane.f32.xlu0 %v1395_v12  ;;  %v1396_v42 = vmul.f32 %v3176_v57, %v3176_v57 }
 0x30d   : > { %v3186_v16 = vsub.f32 %v3104_v18, %v1366_v34  ;;  %1417 = vadd.xlane.f32.xlu1 %v1396_v42  ;;  %v1397_v40 = vmul.f32 %v3181_v6, %v3181_v6 }
 0x30f   : > { %1419 = vadd.xlane.f32.xlu0 %v1397_v40  ;;  %v1398_v19 = vmul.f32 %v3186_v16, %v3186_v16 }
 0x311   : > { %1421 = vadd.xlane.f32.xlu1 %v1398_v19 }
 0x332   : > { %v1343_v46 = vpop.xlane.xlu0 %1342 }
 0x333   : > { %v1367_v2 = vmul.f32 0.0078125, %v1343_v46 }
 0x334   : > { %v1345_v4 = vpop.xlane.xlu1 %1344 }
 0x335   : > { %v3193_v61 = vsub.f32 %v3108_v53, %v1367_v2  ;;  %v1368_v49 = vmul.f32 0.0078125, %v1345_v4 }
 0x336   : > { %v1347_v27 = vpop.xlane.xlu0 %1346 }
 0x337   : > { %v3196_v51 = vsub.f32 %v3110_v10, %v1368_v49  ;;  %v1369_v18 = vmul.f32 0.0078125, %v1347_v27  ;;  %v1399_v21 = vmul.f32 %v3193_v61, %v3193_v61 }
 0x338   : > { %v1349_v43 = vpop.xlane.xlu1 %1348 }
 0x339   : > { %v3201_v20 = vsub.f32 %v3113_v23, %v1369_v18  ;;  %v1370_v9 = vmul.f32 0.0078125, %v1349_v43  ;;  %1423 = vadd.xlane.f32.xlu0 %v1399_v21  ;;  %v1400_v1 = vmul.f32 %v3196_v51, %v3196_v51 }
 0x33b   : > { %v3206_v53 = vsub.f32 %v3116_v56, %v1370_v9  ;;  %1425 = vadd.xlane.f32.xlu1 %v1400_v1  ;;  %v1401_v10 = vmul.f32 %v3201_v20, %v3201_v20 }
 0x33d   : > { %1427 = vadd.xlane.f32.xlu0 %v1401_v10  ;;  %v1402_v26 = vmul.f32 %v3206_v53, %v3206_v53 }
 0x33f   : > { %1429 = vadd.xlane.f32.xlu1 %v1402_v26 }
 0x360   : > { %v1351_v32 = vpop.xlane.xlu0 %1350 }
 0x361   : > { %v1371_v23 = vmul.f32 0.0078125, %v1351_v32 }
 0x362   : > { %v1353_v5 = vpop.xlane.xlu1 %1352 }
 0x363   : > { %v3213_v38 = vsub.f32 %v3120_v29, %v1371_v23  ;;  %v1372_v13 = vmul.f32 0.0078125, %v1353_v5 }
 0x364   : > { %v1355_v30 = vpop.xlane.xlu0 %1354 }
 0x365   : > { %v3216_v56 = vsub.f32 %v3122_v0, %v1372_v13  ;;  %v1373_v36 = vmul.f32 0.0078125, %v1355_v30  ;;  %v1403_v15 = vmul.f32 %v3213_v38, %v3213_v38 }
 0x366   : > { %v1357_v59 = vpop.xlane.xlu1 %1356 }
 0x367   : > { %v3221_v44 = vsub.f32 %v3125_v17, %v1373_v36  ;;  %v1374_v48 = vmul.f32 0.0078125, %v1357_v59  ;;  %1431 = vadd.xlane.f32.xlu0 %v1403_v15  ;;  %v1404_v52 = vmul.f32 %v3216_v56, %v3216_v56 }
 0x369   : > { %v3226_v29 = vsub.f32 %v3128_v37, %v1374_v48  ;;  %1433 = vadd.xlane.f32.xlu1 %v1404_v52  ;;  %v1405_v0 = vmul.f32 %v3221_v44, %v3221_v44 }
 0x36a   : > { %v1408_v39 = vpop.xlane.xlu0 %1407 }
 0x36b   : > { %v1439_v55 = vmul.f32 0.0078125, %v1408_v39  ;;  %1435 = vadd.xlane.f32.xlu0 %v1405_v0  ;;  %v1406_v35 = vmul.f32 %v3226_v29, %v3226_v29 }
 0x36c   : > { %v1410_v17 = vpop.xlane.xlu1 %1409 }
 0x36d   : > { %v1455_v54 = vadd.f32 1e-05, %v1439_v55  ;;  %v1440_v58 = vmul.f32 0.0078125, %v1410_v17  ;;  %1437 = vadd.xlane.f32.xlu1 %v1406_v35 }
 0x36f   : > { %2168 = vrsqrt.f32 %v1455_v54  ;;  %v1456_v62 = vadd.f32 1e-05, %v1440_v58 }
 0x370   : > { %v1412_v3 = vpop.xlane.xlu0 %1411  ;;  %v1414_v8 = vpop.xlane.xlu1 %1413 }
 0x371   : > { %2170 = vrsqrt.f32 %v1456_v62  ;;  %v1441_v37 = vmul.f32 0.0078125, %v1412_v3  ;;  %v1442_v50 = vmul.f32 0.0078125, %v1414_v8 }
 0x373   : > { %v1457_v22 = vadd.f32 1e-05, %v1441_v37  ;;  %v1458_v33 = vadd.f32 1e-05, %v1442_v50 }
 0x375   : > { %2172 = vrsqrt.f32 %v1457_v22 }
 0x376   : > { %2174 = vrsqrt.f32 %v1458_v33 }
 0x379   : > { %v2169_v45 = vpop.eup %2168 }
 0x37a   : > { %v1487_v7 = vmul.f32 %v2169_v45, %v3131_v41 }
 0x37b   : > { %v2171_v11 = vpop.eup %2170 }
 0x37c   : > { %v1488_v24 = vmul.f32 %v2171_v11, %v3134_v14  ;;  %v1508_v12 = vmul.f32 %v3235_v47, %v1487_v7 }
 0x37e   : > { %v1509_v31 = vmul.f32 %v3235_v47, %v1488_v24  ;;  %v1529_v34 = vadd.f32 %v3241_v28, %v1508_v12 }
 0x37f   : > { %v2173_v42 = vpop.eup %2172 }
 0x380   : > { %v2175_v40 = vpop.eup %2174  ;;  %v1530_v19 = vadd.f32 %v3241_v28, %v1509_v31  ;;  %v1489_v41 = vmul.f32 %v2173_v42, %v3142_v63  ;;  %v1545_v2 = vmax.f32 %v1529_v34, 0.0 }
 0x381   : > { %v1490_v46 = vmul.f32 %v2175_v40, %v3138_v60 }
 0x382   : > { %v1546_v4 = vmax.f32 %v1530_v19, 0.0  ;;  %v1510_v49 = vmul.f32 %v3235_v47, %v1489_v41 }
 0x383   : > { %v1511_v14 = vmul.f32 %v3235_v47, %v1490_v46 }
 0x384   : > { %v1561_v27 = vpack.c.bf16 %v1546_v4, %v1545_v2  ;;  %v1531_v18 = vadd.f32 %v3241_v28, %v1510_v49 }
 0x385   : > { %v1532_v21 = vadd.f32 %v3241_v28, %v1511_v14 }
 0x386   : > { %2040 = vmatprep.mubr.bf16.mxu1 %v1561_v27  ;;  %v1547_v43 = vmax.f32 %v1531_v18, 0.0 }
 0x387   : > { %v1548_v9 = vmax.f32 %v1532_v21, 0.0 }
 0x389   : > { %v1562_v1 = vpack.c.bf16 %v1548_v9, %v1547_v43 }
 0x38b   : > { %2041 = vmatmul.mubr.bf16.vlgmr.msra.gmra.mrb[0].mxu1 %v1562_v1 }
 0x398   : > { %v1416_v10 = vpop.xlane.xlu0 %1415 }
 0x399   : > { %v1443_v63 = vmul.f32 0.0078125, %v1416_v10 }
 0x39a   : > { %v1418_v26 = vpop.xlane.xlu1 %1417 }
 0x39b   : > { %v1459_v60 = vadd.f32 1e-05, %v1443_v63  ;;  %v1444_v32 = vmul.f32 0.0078125, %v1418_v26 }
 0x39c   : > { %v1420_v23 = vpop.xlane.xlu0 %1419 }
 0x39d   : > { %2176 = vrsqrt.f32 %v1459_v60  ;;  %v1460_v5 = vadd.f32 1e-05, %v1444_v32  ;;  %v1445_v13 = vmul.f32 0.0078125, %v1420_v23 }
 0x39e   : > { %v1422_v30 = vpop.xlane.xlu1 %1421 }
 0x39f   : > { %2178 = vrsqrt.f32 %v1460_v5  ;;  %v1461_v36 = vadd.f32 1e-05, %v1445_v13  ;;  %v1446_v15 = vmul.f32 0.0078125, %v1422_v30 }
 0x3a1   : > { %2180 = vrsqrt.f32 %v1461_v36  ;;  %v1462_v59 = vadd.f32 1e-05, %v1446_v15 }
 0x3a3   : > { %2182 = vrsqrt.f32 %v1462_v59 }
 0x3a7   : > { %v2177_v48 = vpop.eup %2176 }
 0x3a8   : > { %v1491_v52 = vmul.f32 %v2177_v48, %v3173_v25 }
 0x3a9   : > { %v2179_v0 = vpop.eup %2178 }
 0x3aa   : > { %v1492_v39 = vmul.f32 %v2179_v0, %v3176_v57  ;;  %v1512_v55 = vmul.f32 %v3235_v47, %v1491_v52 }
 0x3ab   : > { %v2181_v35 = vpop.eup %2180 }
 0x3ac   : > { %v1513_v17 = vmul.f32 %v3235_v47, %v1492_v39  ;;  %v1533_v54 = vadd.f32 %v3241_v28, %v1512_v55  ;;  %v1493_v58 = vmul.f32 %v2181_v35, %v3181_v6 }
 0x3ad   : > { %v2183_v62 = vpop.eup %2182 }
 0x3ae   : > { %v1534_v3 = vadd.f32 %v3241_v28, %v1513_v17  ;;  %v1494_v8 = vmul.f32 %v2183_v62, %v3186_v16  ;;  %v1514_v37 = vmul.f32 %v3235_v47, %v1493_v58  ;;  %v1549_v25 = vmax.f32 %v1533_v54, 0.0 }
 0x3b0   : > { %v1550_v50 = vmax.f32 %v1534_v3, 0.0  ;;  %v1515_v57 = vmul.f32 %v3235_v47, %v1494_v8  ;;  %v1535_v22 = vadd.f32 %v3241_v28, %v1514_v37 }
 0x3b2   : > { %v1563_v33 = vpack.c.bf16 %v1550_v50, %v1549_v25  ;;  %v1536_v45 = vadd.f32 %v3241_v28, %v1515_v57  ;;  %v1551_v7 = vmax.f32 %v1535_v22, 0.0 }
 0x3b4   : > { %2044 = vmatprep.mubr.bf16.mxu1 %v1563_v33  ;;  %v1552_v11 = vmax.f32 %v1536_v45, 0.0 }
 0x3b6   : > { %v1564_v6 = vpack.c.bf16 %v1552_v11, %v1551_v7 }
 0x3b8   : > { %2045 = vmatmul.mubr.bf16.gmra.mrb[4].mxu1 %v1564_v6 }
 0x3c6   : > { %v1424_v24 = vpop.xlane.xlu0 %1423 }
 0x3c7   : > { %v1447_v12 = vmul.f32 0.0078125, %v1424_v24 }
 0x3c8   : > { %v1426_v31 = vpop.xlane.xlu1 %1425 }
 0x3c9   : > { %v1463_v16 = vadd.f32 1e-05, %v1447_v12  ;;  %v1448_v34 = vmul.f32 0.0078125, %v1426_v31 }
 0x3ca   : > { %v1428_v42 = vpop.xlane.xlu0 %1427 }
 0x3cb   : > { %2184 = vrsqrt.f32 %v1463_v16  ;;  %v1464_v40 = vadd.f32 1e-05, %v1448_v34  ;;  %v1449_v19 = vmul.f32 0.0078125, %v1428_v42 }
 0x3cc   : > { %v1430_v41 = vpop.xlane.xlu1 %1429 }
 0x3cd   : > { %2186 = vrsqrt.f32 %v1464_v40  ;;  %v1465_v46 = vadd.f32 1e-05, %v1449_v19  ;;  %v1450_v2 = vmul.f32 0.0078125, %v1430_v41 }
 0x3cf   : > { %2188 = vrsqrt.f32 %v1465_v46  ;;  %v1466_v4 = vadd.f32 1e-05, %v1450_v2 }
 0x3d1   : > { %2190 = vrsqrt.f32 %v1466_v4 }
 0x3d5   : > { %v2185_v49 = vpop.eup %2184 }
 0x3d6   : > { %v1495_v14 = vmul.f32 %v2185_v49, %v3193_v61 }
 0x3d7   : > { %v2187_v27 = vpop.eup %2186 }
 0x3d8   : > { %v1496_v18 = vmul.f32 %v2187_v27, %v3196_v51  ;;  %v1516_v21 = vmul.f32 %v3235_v47, %v1495_v14 }
 0x3d9   : > { %v2189_v43 = vpop.eup %2188 }
 0x3da   : > { %v1517_v9 = vmul.f32 %v3235_v47, %v1496_v18  ;;  %v1537_v1 = vadd.f32 %v3241_v28, %v1516_v21  ;;  %v1497_v10 = vmul.f32 %v2189_v43, %v3201_v20 }
 0x3db   : > { %v2191_v63 = vpop.eup %2190 }
 0x3dc   : > { %v1538_v26 = vadd.f32 %v3241_v28, %v1517_v9  ;;  %v1498_v60 = vmul.f32 %v2191_v63, %v3206_v53  ;;  %v1518_v32 = vmul.f32 %v3235_v47, %v1497_v10  ;;  %v1553_v61 = vmax.f32 %v1537_v1, 0.0 }
 0x3de   : > { %v1554_v23 = vmax.f32 %v1538_v26, 0.0  ;;  %v1519_v51 = vmul.f32 %v3235_v47, %v1498_v60  ;;  %v1539_v5 = vadd.f32 %v3241_v28, %v1518_v32 }
 0x3e0   : > { %v1565_v13 = vpack.c.bf16 %v1554_v23, %v1553_v61  ;;  %v1540_v30 = vadd.f32 %v3241_v28, %v1519_v51  ;;  %v1555_v36 = vmax.f32 %v1539_v5, 0.0 }
 0x3e2   : > { %2048 = vmatprep.mubr.bf16.mxu1 %v1565_v13  ;;  %v1556_v15 = vmax.f32 %v1540_v30, 0.0 }
 0x3e4   : > { %v1566_v20 = vpack.c.bf16 %v1556_v15, %v1555_v36 }
 0x3e6   : > { %2049 = vmatmul.mubr.bf16.gmra.mrb[8].mxu1 %v1566_v20 }
 0x3f4   : > { %v1432_v59 = vpop.xlane.xlu0 %1431 }
 0x3f5   : > { %v1451_v48 = vmul.f32 0.0078125, %v1432_v59 }
 0x3f6   : > { %v1434_v52 = vpop.xlane.xlu1 %1433 }
 0x3f7   : > { %v1467_v53 = vadd.f32 1e-05, %v1451_v48  ;;  %v1452_v0 = vmul.f32 0.0078125, %v1434_v52 }
 0x3f8   : > { %v1436_v39 = vpop.xlane.xlu0 %1435 }
 0x3f9   : > { %2192 = vrsqrt.f32 %v1467_v53  ;;  %v1468_v55 = vadd.f32 1e-05, %v1452_v0  ;;  %v1453_v35 = vmul.f32 0.0078125, %v1436_v39 }
 0x3fa   : > { %v1438_v17 = vpop.xlane.xlu1 %1437 }
 0x3fb   : > { %2194 = vrsqrt.f32 %v1468_v55  ;;  %v1469_v54 = vadd.f32 1e-05, %v1453_v35  ;;  %v1454_v58 = vmul.f32 0.0078125, %v1438_v17 }
 0x3fd   : > { %2196 = vrsqrt.f32 %v1469_v54  ;;  %v1470_v62 = vadd.f32 1e-05, %v1454_v58 }
 0x3ff   : > { %2198 = vrsqrt.f32 %v1470_v62 }
 0x403   : > { %v2193_v3 = vpop.eup %2192 }
 0x404   : > { %v1499_v8 = vmul.f32 %v2193_v3, %v3213_v38 }
 0x405   : > { %v2195_v37 = vpop.eup %2194 }
 0x406   : > { %v1500_v25 = vmul.f32 %v2195_v37, %v3216_v56  ;;  %v1520_v50 = vmul.f32 %v3235_v47, %v1499_v8 }
 0x407   : > { %v2197_v57 = vpop.eup %2196 }
 0x408   : > { %v1521_v22 = vmul.f32 %v3235_v47, %v1500_v25  ;;  %v1541_v33 = vadd.f32 %v3241_v28, %v1520_v50  ;;  %v1501_v45 = vmul.f32 %v2197_v57, %v3221_v44 }
 0x409   : > { %v2199_v7 = vpop.eup %2198 }
 0x40a   : > { %v1542_v11 = vadd.f32 %v3241_v28, %v1521_v22  ;;  %v1502_v6 = vmul.f32 %v2199_v7, %v3226_v29  ;;  %v1522_v38 = vmul.f32 %v3235_v47, %v1501_v45  ;;  %v1557_v24 = vmax.f32 %v1541_v33, 0.0  ;;  %v1901_v29 = vld [vmem:[%s3323_s4] ss:$0 sm:$0xff] }
 0x40c   : > { %v1558_v12 = vmax.f32 %v1542_v11, 0.0  ;;  %v1523_v56 = vmul.f32 %v3235_v47, %v1502_v6  ;;  %v1543_v31 = vadd.f32 %v3241_v28, %v1522_v38 }
 0x40e   : > { %v1567_v16 = vpack.c.bf16 %v1558_v12, %v1557_v24  ;;  %v1544_v34 = vadd.f32 %v3241_v28, %v1523_v56  ;;  %v1559_v42 = vmax.f32 %v1543_v31, 0.0 }
 0x410   : > { %2052 = vmatprep.mubr.bf16.mxu1 %v1567_v16  ;;  %v1560_v44 = vmax.f32 %v1544_v34, 0.0 }
 0x412   : > { %v1568_v40 = vpack.c.bf16 %v1560_v44, %v1559_v42 }
 0x414   : > { %2053 = vmatmul.mubr.bf16.gmra.mrb[12].mxu1 %v1568_v40 }
 0x45e   : > { %v2042_v47 = vpop.f32.mrb[0].mxu1 }
 0x45f   : > { %v1683_v28 = vadd.f32 %v2042_v47, %v1901_v29  ;;  %v1674_v19 = vpop.f32.mrb[1].mxu1 }
 0x460   : > { %v1675_v41 = vadd.f32 %v1901_v29, %v1674_v19  ;;  %v2043_v46 = vpop.f32.mrb[2].mxu1 }
 0x461   : > { %1739 = vst [vmem:[%s3298_s14 + $0x10] sm:$0xff] %v1683_v28  ;;  %v1686_v2 = vadd.f32 %v2043_v46, %v1901_v29  ;;  %v1677_v4 = vpop.f32.mrb[3].mxu1 }
 0x462   : > { %1737 = vst [vmem:[%s3298_s14] sm:$0xff] %v1675_v41  ;;  %v1678_v49 = vadd.f32 %v1901_v29, %v1677_v4 }
 0x463   : > { %1740 = vst [vmem:[%s3298_s14 + $0x18] sm:$0xff] %v1686_v2 }
 0x464   : > { %1738 = vst [vmem:[%s3298_s14 + $0x8] sm:$0xff] %v1678_v49 }
 0x48b   : > { %v2046_v14 = vpop.f32.mrb[4].mxu1 }
 0x48c   : > { %v1699_v27 = vadd.f32 %v2046_v14, %v1901_v29  ;;  %v1690_v18 = vpop.f32.mrb[5].mxu1 }
 0x48d   : > { %v1691_v21 = vadd.f32 %v1901_v29, %v1690_v18  ;;  %v2047_v43 = vpop.f32.mrb[6].mxu1 }
 0x48e   : > { %1743 = vst [vmem:[%s3298_s14 + $0x30] sm:$0xff] %v1699_v27  ;;  %v1702_v9 = vadd.f32 %v2047_v43, %v1901_v29  ;;  %v1693_v1 = vpop.f32.mrb[7].mxu1 }
 0x48f   : > { %1741 = vst [vmem:[%s3298_s14 + $0x20] sm:$0xff] %v1691_v21  ;;  %v1694_v10 = vadd.f32 %v1901_v29, %v1693_v1 }
 0x490   : > { %1744 = vst [vmem:[%s3298_s14 + $0x38] sm:$0xff] %v1702_v9 }
 0x491   : > { %1742 = vst [vmem:[%s3298_s14 + $0x28] sm:$0xff] %v1694_v10 }
 0x4b9   : > { %v2050_v63 = vpop.f32.mrb[8].mxu1 }
 0x4ba   : > { %v1715_v26 = vadd.f32 %v2050_v63, %v1901_v29  ;;  %v1706_v60 = vpop.f32.mrb[9].mxu1 }
 0x4bb   : > { %v1707_v32 = vadd.f32 %v1901_v29, %v1706_v60  ;;  %v2051_v61 = vpop.f32.mrb[10].mxu1 }
 0x4bc   : > { %1747 = vst [vmem:[%s3298_s14 + $0x50] sm:$0xff] %v1715_v26  ;;  %v1718_v23 = vadd.f32 %v2051_v61, %v1901_v29  ;;  %v1709_v51 = vpop.f32.mrb[11].mxu1 }
 0x4bd   : > { %1745 = vst [vmem:[%s3298_s14 + $0x40] sm:$0xff] %v1707_v32  ;;  %v1710_v5 = vadd.f32 %v1901_v29, %v1709_v51 }
 0x4be   : > { %1748 = vst [vmem:[%s3298_s14 + $0x58] sm:$0xff] %v1718_v23 }
 0x4bf   : > { %1746 = vst [vmem:[%s3298_s14 + $0x48] sm:$0xff] %v1710_v5 }
 0x4e7   : > { %v2054_v13 = vpop.f32.mrb[12].mxu1 }
 0x4e8   : > { %v1731_v30 = vadd.f32 %v2054_v13, %v1901_v29  ;;  %v1722_v36 = vpop.f32.mrb[13].mxu1 }
 0x4e9   : > { %v1723_v15 = vadd.f32 %v1901_v29, %v1722_v36  ;;  %v2055_v20 = vpop.f32.mrb[14].mxu1 }
 0x4ea   : > { %1751 = vst [vmem:[%s3298_s14 + $0x70] sm:$0xff] %v1731_v30  ;;  %v1734_v59 = vadd.f32 %v2055_v20, %v1901_v29  ;;  %v1725_v48 = vpop.f32.mrb[15].mxu1 }
 0x4eb   : > { %1749 = vst [vmem:[%s3298_s14 + $0x60] sm:$0xff] %v1723_v15  ;;  %v1726_v52 = vadd.f32 %v1901_v29, %v1725_v48 }
 0x4ec   : > { %1752 = vst [vmem:[%s3298_s14 + $0x78] sm:$0xff] %v1734_v59 }
 0x4ed   : > { %1750 = vst [vmem:[%s3298_s14 + $0x68] sm:$0xff] %v1726_v52 }
 0x4ee PF: > { %s15_s18 = sadd.s32 1, %s2206_s18  }
 0x4ef   : > { %p12_p4 = scmp.ge.s32.totalorder %s15_s18, 4  }
 0x4f1   :  { %14 = sbr.rel (!%p12_p4) target bundleno = 1 (0x1), region = 70 }

</bundles_post_ra>
